<compile_context>
chip_gen: v6e
topology: v6e:2x2x1
jax: 0.10.0
libtpu: 0.0.40
codegen_flags: <defaults>
</compile_context>

<pallas_src>
import functools

import jax
import jax.numpy as jnp
from jax import lax
from jax.experimental import pallas as pl
from jax.experimental.pallas import tpu as pltpu

BN_EPS = 1e-5        # nn.BatchNorm1d default eps
L2_EPS = 1e-12       # F.normalize default eps


def projection_head_kernel(pooled_ref, w1_ref, gb_ref, w2_ref,
                           out_ref, sum_ref, sq_ref, *rest,
                           n_total, tile_n, cache_h):
    h_cache_ref = rest[0] if cache_h else None

    phase = pl.program_id(0)      # 0: accumulate BN batch stats, 1: normalize + project
    t = pl.program_id(1)          # N-tile index

    # Row-validity mask for a possible partial last tile.
    row = t * tile_n + lax.broadcasted_iota(jnp.int32, (tile_n, 1), 0)
    valid = row < n_total                                             # (tile_n, 1)

    def first_matmul():
        # pooled is streamed as bf16; f32 accumulation on the MXU.
        return jnp.dot(pooled_ref[...], w1_ref[...],
                       preferred_element_type=jnp.float32)            # (tile_n, hidden) f32

    @pl.when(phase == 0)
    def _accumulate_stats():
        @pl.when(t == 0)
        def _init():
            sum_ref[...] = jnp.zeros_like(sum_ref)
            sq_ref[...] = jnp.zeros_like(sq_ref)

        h = first_matmul()
        if cache_h:
            # Persist h so phase 1 neither re-streams `pooled` nor re-runs the first matmul.
            h_cache_ref[t] = h.astype(jnp.bfloat16)

        hm = jnp.where(valid, h, 0.0)
        sum_ref[...] += jnp.sum(hm, axis=0, keepdims=True)
        sq_ref[...] += jnp.sum(hm * hm, axis=0, keepdims=True)

    @pl.when(phase == 1)
    def _normalize_and_project():
        @pl.when(t == 0)
        def _finalize_stats():
            inv_n = 1.0 / n_total
            mu = sum_ref[...] * inv_n
            # Clamp: E[h^2] - E[h]^2 can go slightly negative from f32 cancellation.
            var = jnp.maximum(sq_ref[...] * inv_n - mu * mu, 0.0)
            scale = gb_ref[0:1, :] * lax.rsqrt(var + BN_EPS)          # gamma row
            shift = gb_ref[1:2, :] - mu * scale                       # beta row
            sum_ref[...] = scale                     # reuse the stat scratch as BN scale
            sq_ref[...] = shift                      # ... and BN shift

        if cache_h:
            h = h_cache_ref[t].astype(jnp.float32)
        else:
            h = first_matmul()

        # Folded BN affine + ReLU: one FMA pass over (tile_n, hidden).
        a = jnp.maximum(h * sum_ref[...] + sq_ref[...], 0.0)
        o = jnp.dot(a.astype(jnp.bfloat16), w2_ref[...],
                    preferred_element_type=jnp.float32)               # (tile_n, out)

        # F.normalize(dim=1): o / max(||o||, eps)  ==  o * rsqrt(max(||o||^2, eps^2))
        ss = jnp.sum(o * o, axis=1, keepdims=True)
        out_ref[...] = o * lax.rsqrt(jnp.maximum(ss, L2_EPS * L2_EPS))


def _tpu_vmem_capacity_bytes():
    # Generation-aware VMEM budget: v5e/v6e have 128 MiB, v7x has 64 MiB per core.
    try:
        return int(pltpu.get_tpu_info().vmem_capacity_bytes)
    except Exception:
        return 64 << 20          # conservative fallback (v7x-sized)


@functools.partial(jax.jit, static_argnames=("tile_n",))
def projection_head(x_nchw, w1_t, b1, gamma, beta, w2_t, *, tile_n=256):
    """Train-mode forward of ProjectionHead.

    x_nchw: (N, C, H, W) f32.  w1_t: (C, hidden), w2_t: (hidden, out) pre-transposed.
    BatchNorm uses batch statistics (PyTorch train mode); b1 is cancelled exactly by the
    BN mean subtraction and is therefore not shipped to the kernel.  Eval-mode (running
    stats) would require both the bias and the stored statistics — not implemented here.
    """
    N, C, H, W = x_nchw.shape
    hidden = w1_t.shape[1]
    out_dim = w2_t.shape[1]

    # AdaptiveAvgPool2d((1,1)) + Flatten hoisted out of the kernel; stream bf16 so the
    # per-tile input DMA is half-width (the MXU consumes bf16 anyway).
    pooled = jnp.mean(x_nchw.reshape(N, C, H * W), axis=-1).astype(jnp.bfloat16)

    del b1   # exactly cancelled by train-mode BN mean subtraction

    w1_bf = w1_t.astype(jnp.bfloat16)
    w2_bf = w2_t.astype(jnp.bfloat16)
    # gamma/beta fused into one (2, hidden) resident block: row 0 = gamma, row 1 = beta.
    gb = jnp.stack([gamma, beta], axis=0).astype(jnp.float32)

    # tile_n >= 256 fills the 256-wide MXU on v6e/v7x; 128 already fills v5e's 4x128x128.
    tile_n = min(tile_n, N)
    if tile_n < N:                        # respect the (8,128) rule on the sublane dim
        tile_n = max(8, (tile_n // 8) * 8)
    n_tiles = pl.cdiv(N, tile_n)

    # --- VMEM budget bookkeeping (bytes) ---------------------------------------------
    io_bytes = 2 * (tile_n * C * 2 + tile_n * out_dim * 4)       # double-buffered tiles
    # TODO(synk): mark w1/gb/w2 with pipeline_mode=pl.Buffered(1) (constant index maps ->
    # the second buffer is pure waste) once single-buffered BlockSpecs are validated on
    # the deployed jax version; budget them double-buffered for now.
    weight_bytes = 2 * (C * hidden * 2 + hidden * out_dim * 2 + 2 * hidden * 4)
    stat_bytes = 2 * hidden * 4
    cache_bytes = n_tiles * tile_n * hidden * 2                  # bf16 h cache
    slack = 2 << 20

    vmem_cap = (_tpu_vmem_capacity_bytes() * 3) // 4             # ~48 MiB v7x, ~96 MiB v5e/v6e
    # Cache h across the two phases whenever it fits next to the resident weights: this
    # halves both the input streaming and the first-matmul MXU work.
    cache_h = (io_bytes + weight_bytes + stat_bytes + cache_bytes + slack) <= vmem_cap

    est = io_bytes + weight_bytes + stat_bytes + slack + (cache_bytes if cache_h else 0)
    vmem_limit = int(max(16 << 20, min(est, vmem_cap)))

    kernel = functools.partial(projection_head_kernel,
                               n_total=N, tile_n=tile_n, cache_h=cache_h)

    if cache_h:
        # Phase 1 never reads `pooled`; pin its block index to the last phase-0 block so
        # the pipeline issues no input DMAs at all during phase 1.
        pooled_map = lambda p, t: ((1 - p) * t + p * (n_tiles - 1), 0)
    else:
        pooled_map = lambda p, t: (t, 0)

    scratch_shapes = [
        pltpu.VMEM((1, hidden), jnp.float32),   # sum(h)   -> BN scale after finalize
        pltpu.VMEM((1, hidden), jnp.float32),   # sum(h^2) -> BN shift after finalize
    ]
    if cache_h:
        scratch_shapes.append(pltpu.VMEM((n_tiles, tile_n, hidden), jnp.bfloat16))

    first_mm_passes = 1 if cache_h else 2
    cost = pl.CostEstimate(
        flops=2 * N * C * hidden * first_mm_passes + 2 * N * hidden * out_dim,
        transcendentals=hidden + N,                     # BN rsqrt + per-row L2 rsqrt
        bytes_accessed=(N * C * 2 * first_mm_passes
                        + (C * hidden + hidden * out_dim) * 2
                        + 2 * hidden * 4
                        + N * out_dim * 4),
    )

    return pl.pallas_call(
        kernel,
        out_shape=jax.ShapeDtypeStruct((N, out_dim), jnp.float32),
        grid=(2, n_tiles),                # (BN phase, N tile) — phase outermost
        in_specs=[
            pl.BlockSpec((tile_n, C), pooled_map),                 # streamed per tile (bf16)
            pl.BlockSpec((C, hidden), lambda p, t: (0, 0)),        # VMEM-resident weights
            pl.BlockSpec((2, hidden), lambda p, t: (0, 0)),        # [gamma; beta]
            pl.BlockSpec((hidden, out_dim), lambda p, t: (0, 0)),
        ],
        # During phase 0 every step maps to output block 0 and nothing is written, so no
        # garbage block is flushed to HBM; phase 1 walks the real tiles (monotonic indices).
        # NOTE: this mapping relies on the phase axis staying sequential and outermost.
        out_specs=pl.BlockSpec((tile_n, out_dim), lambda p, t: (t * p, 0)),
        scratch_shapes=scratch_shapes,
        compiler_params=pltpu.CompilerParams(
            # Both axes sequential: the phase axis carries the BN-stat scratch and the tile
            # axis accumulates into it.
            # TODO(synk): for v7x megacore, accumulate per-core partial stats (or split into
            # a stats pallas_call + apply pallas_call) so the tile axis can be "parallel".
            dimension_semantics=("arbitrary", "arbitrary"),
            vmem_limit_bytes=vmem_limit,
        ),
        cost_estimate=cost,
    )(pooled, w1_bf, gb, w2_bf)


def reference(x_nchw, w1_t, b1, gamma, beta, w2_t):
    N, C, H, W = x_nchw.shape
    pooled = jnp.mean(x_nchw.reshape(N, C, H * W), axis=-1)
    h = pooled @ w1_t + b1
    mu = jnp.mean(h, axis=0, keepdims=True)
    var = jnp.mean((h - mu) ** 2, axis=0, keepdims=True)
    h = (h - mu) / jnp.sqrt(var + BN_EPS) * gamma + beta
    h = jnp.maximum(h, 0.0)
    o = h @ w2_t
    nrm = jnp.sqrt(jnp.sum(o * o, axis=1, keepdims=True))
    return o / jnp.maximum(nrm, L2_EPS)


if __name__ == "__main__":
    # Small shapes consistent with the module (input_dim=C, hidden_dim, output_dim).
    # N=512 with the default tile_n=256 exercises the multi-tile two-phase path while
    # presenting M=256 to the MXU (native fill on v6e/v7x).
    N, C, H, W = 512, 256, 4, 4
    HIDDEN, OUT = 256, 128

    key = jax.random.PRNGKey(0)
    kx, k1, kb, k2 = jax.random.split(key, 4)

    x = jax.random.normal(kx, (N, C, H, W), dtype=jnp.float32)
    # Linear weights stored pre-transposed: (in_features, out_features).
    w1_t = jax.random.normal(k1, (C, HIDDEN), dtype=jnp.float32) * 0.02
    b1 = jax.random.normal(kb, (HIDDEN,), dtype=jnp.float32) * 0.01
    gamma = jnp.ones((HIDDEN,), dtype=jnp.float32)   # BatchNorm1d weight init
    beta = jnp.zeros((HIDDEN,), dtype=jnp.float32)   # BatchNorm1d bias init
    w2_t = jax.random.normal(k2, (HIDDEN, OUT), dtype=jnp.float32) * 0.02

    out = projection_head(x, w1_t, b1, gamma, beta, w2_t)
    out = jax.block_until_ready(out)

    ref = reference(x, w1_t, b1, gamma, beta, w2_t)
    assert out.shape == (N, OUT)
    # bf16 MXU operands / bf16 h cache (f32 accumulation) -> relaxed tolerance.
    max_err = float(jnp.max(jnp.abs(out - ref)))
    assert max_err < 2e-2, f"mismatch vs JAX reference: max abs err {max_err}"
    norms = jnp.linalg.norm(out, axis=1)
    assert bool(jnp.all(jnp.abs(norms - 1.0) < 1e-3)), "rows not L2-normalized"

    print("KERNEL_OK")
</pallas_src>

<mosaic_0001>
module attributes {stable_mosaic.version = 11 : i64} {
  func.func @projection_head_kernel(%arg0: i32, %arg1: i32, %arg2: memref<256x256xbf16, #tpu.memory_space<vmem>>, %arg3: memref<256x256xbf16, #tpu.memory_space<vmem>>, %arg4: memref<2x256xf32, #tpu.memory_space<vmem>>, %arg5: memref<256x128xbf16, #tpu.memory_space<vmem>>, %arg6: memref<256x128xf32, #tpu.memory_space<vmem>>, %arg7: memref<1x256xf32, #tpu.memory_space<vmem>>, %arg8: memref<1x256xf32, #tpu.memory_space<vmem>>, %arg9: memref<2x256x256xbf16, #tpu.memory_space<vmem>>) attributes {dimension_semantics = [#tpu.dimension_semantics<arbitrary>, #tpu.dimension_semantics<arbitrary>], iteration_bounds = array<i64: 2, 2>, scalar_prefetch = 0 : i64, scratch_operands = 3 : i64, tpu.core_type = #tpu.core_type<tc>, window_params = [{transform_indices = @transform_0, window_bounds = array<i64: 256, 256>}, {pipeline_mode = #tpu.pipeline_mode<synchronous>, transform_indices = @transform_1, window_bounds = array<i64: 256, 256>}, {pipeline_mode = #tpu.pipeline_mode<synchronous>, transform_indices = @transform_2, window_bounds = array<i64: 2, 256>}, {pipeline_mode = #tpu.pipeline_mode<synchronous>, transform_indices = @transform_3, window_bounds = array<i64: 256, 128>}, {transform_indices = @transform_4, window_bounds = array<i64: 256, 128>}]} {
    %c256_i32 = arith.constant 256 : i32
    %0 = arith.muli %arg1, %c256_i32 : i32
    %1 = tpu.iota {dimensions = array<i32: 0>} : vector<256x1xi32>
    %2 = vector.broadcast %0 : i32 to vector<256x1xi32>
    %3 = arith.addi %2, %1 : vector<256x1xi32>
    %c512_i32 = arith.constant 512 : i32
    %4 = vector.broadcast %c512_i32 : i32 to vector<256x1xi32>
    %5 = arith.cmpi slt, %3, %4 : vector<256x1xi32>
    %c0_i32 = arith.constant 0 : i32
    %6 = arith.cmpi eq, %arg0, %c0_i32 : i32
    %7 = arith.extui %6 : i1 to i32
    %c0_i32_0 = arith.constant 0 : i32
    %8 = arith.cmpi ne, %7, %c0_i32_0 : i32
    scf.if %8 {
      %c0_i32_2 = arith.constant 0 : i32
      %12 = arith.cmpi eq, %arg1, %c0_i32_2 : i32
      %13 = arith.extui %12 : i1 to i32
      %c0_i32_3 = arith.constant 0 : i32
      %14 = arith.cmpi ne, %13, %c0_i32_3 : i32
      scf.if %14 {
        %cst_20 = arith.constant 0.000000e+00 : f32
        %38 = vector.broadcast %cst_20 : f32 to vector<1x256xf32>
        %c0_21 = arith.constant 0 : index
        %c0_22 = arith.constant 0 : index
        %39 = vector.load %arg7[%c0_21, %c0_22] : memref<1x256xf32, #tpu.memory_space<vmem>>, vector<1x256xf32>
        tpu.vector_store %arg7[%c0_21, %c0_22], %38 {strides = array<i32>} : memref<1x256xf32, #tpu.memory_space<vmem>>, vector<1x256xf32>,
        %cst_23 = arith.constant 0.000000e+00 : f32
        %40 = vector.broadcast %cst_23 : f32 to vector<1x256xf32>
        %c0_24 = arith.constant 0 : index
        %c0_25 = arith.constant 0 : index
        %41 = vector.load %arg8[%c0_24, %c0_25] : memref<1x256xf32, #tpu.memory_space<vmem>>, vector<1x256xf32>
        tpu.vector_store %arg8[%c0_24, %c0_25], %40 {strides = array<i32>} : memref<1x256xf32, #tpu.memory_space<vmem>>, vector<1x256xf32>,
      } else {
      }
      %c0 = arith.constant 0 : index
      %c0_4 = arith.constant 0 : index
      %15 = vector.load %arg2[%c0, %c0_4] : memref<256x256xbf16, #tpu.memory_space<vmem>>, vector<256x256xbf16>
      %c0_5 = arith.constant 0 : index
      %c0_6 = arith.constant 0 : index
      %16 = vector.load %arg3[%c0_5, %c0_6] : memref<256x256xbf16, #tpu.memory_space<vmem>>, vector<256x256xbf16>
      %cst = arith.constant dense<0.000000e+00> : vector<256x256xf32>
      %17 = tpu.matmul %15, %16, %cst {dimension_numbers = #tpu.dot_dimension_numbers<[1], [0], [0], [1], [0, 0, 1, 1], [], []>} : vector<256x256xbf16>, vector<256x256xbf16>, vector<256x256xf32> -> vector<256x256xf32>
      %18 = arith.truncf %17 : vector<256x256xf32> to vector<256x256xbf16>
      %19 = arith.index_cast %arg1 : i32 to index
      %c0_7 = arith.constant 0 : index
      %c0_8 = arith.constant 0 : index
      %20 = vector.load %arg9[%19, %c0_7, %c0_8] : memref<2x256x256xbf16, #tpu.memory_space<vmem>>, vector<1x256x256xbf16>
      %21 = vector.shape_cast %20 : vector<1x256x256xbf16> to vector<256x256xbf16>
      %22 = vector.shape_cast %18 : vector<256x256xbf16> to vector<1x256x256xbf16>
      tpu.vector_store %arg9[%19, %c0_7, %c0_8], %22 {strides = array<i32>} : memref<2x256x256xbf16, #tpu.memory_space<vmem>>, vector<1x256x256xbf16>,
      %cst_9 = arith.constant 0.000000e+00 : f32
      %23 = vector.shape_cast %5 : vector<256x1xi1> to vector<256x1xi1>
      %24 = vector.broadcast %23 : vector<256x1xi1> to vector<256x256xi1>
      %25 = vector.broadcast %cst_9 : f32 to vector<256x256xf32>
      %26 = arith.select %24, %17, %25 : vector<256x256xi1>, vector<256x256xf32>
      %c0_10 = arith.constant 0 : index
      %c0_11 = arith.constant 0 : index
      %27 = vector.load %arg7[%c0_10, %c0_11] : memref<1x256xf32, #tpu.memory_space<vmem>>, vector<1x256xf32>
      %cst_12 = arith.constant dense<0.000000e+00> : vector<256xf32>
      %28 = vector.multi_reduction <add>, %26, %cst_12 [0] : vector<256x256xf32> to vector<256xf32>
      %29 = vector.shape_cast %28 : vector<256xf32> to vector<1x256xf32>
      %30 = arith.addf %27, %29 : vector<1x256xf32>
      %c0_13 = arith.constant 0 : index
      %c0_14 = arith.constant 0 : index
      %31 = vector.load %arg7[%c0_13, %c0_14] : memref<1x256xf32, #tpu.memory_space<vmem>>, vector<1x256xf32>
      tpu.vector_store %arg7[%c0_13, %c0_14], %30 {strides = array<i32>} : memref<1x256xf32, #tpu.memory_space<vmem>>, vector<1x256xf32>,
      %c0_15 = arith.constant 0 : index
      %c0_16 = arith.constant 0 : index
      %32 = vector.load %arg8[%c0_15, %c0_16] : memref<1x256xf32, #tpu.memory_space<vmem>>, vector<1x256xf32>
      %33 = arith.mulf %26, %26 : vector<256x256xf32>
      %cst_17 = arith.constant dense<0.000000e+00> : vector<256xf32>
      %34 = vector.multi_reduction <add>, %33, %cst_17 [0] : vector<256x256xf32> to vector<256xf32>
      %35 = vector.shape_cast %34 : vector<256xf32> to vector<1x256xf32>
      %36 = arith.addf %32, %35 : vector<1x256xf32>
      %c0_18 = arith.constant 0 : index
      %c0_19 = arith.constant 0 : index
      %37 = vector.load %arg8[%c0_18, %c0_19] : memref<1x256xf32, #tpu.memory_space<vmem>>, vector<1x256xf32>
      tpu.vector_store %arg8[%c0_18, %c0_19], %36 {strides = array<i32>} : memref<1x256xf32, #tpu.memory_space<vmem>>, vector<1x256xf32>,
    } else {
    }
    %c1_i32 = arith.constant 1 : i32
    %9 = arith.cmpi eq, %arg0, %c1_i32 : i32
    %10 = arith.extui %9 : i1 to i32
    %c0_i32_1 = arith.constant 0 : i32
    %11 = arith.cmpi ne, %10, %c0_i32_1 : i32
    scf.if %11 {
      %c0_i32_2 = arith.constant 0 : i32
      %12 = arith.cmpi eq, %arg1, %c0_i32_2 : i32
      %13 = arith.extui %12 : i1 to i32
      %c0_i32_3 = arith.constant 0 : i32
      %14 = arith.cmpi ne, %13, %c0_i32_3 : i32
      scf.if %14 {
        %c0_16 = arith.constant 0 : index
        %c0_17 = arith.constant 0 : index
        %39 = vector.load %arg7[%c0_16, %c0_17] : memref<1x256xf32, #tpu.memory_space<vmem>>, vector<1x256xf32>
        %cst_18 = arith.constant 0.001953125 : f32
        %40 = vector.broadcast %cst_18 : f32 to vector<1x256xf32>
        %41 = arith.mulf %39, %40 : vector<1x256xf32>
        %c0_19 = arith.constant 0 : index
        %c0_20 = arith.constant 0 : index
        %42 = vector.load %arg8[%c0_19, %c0_20] : memref<1x256xf32, #tpu.memory_space<vmem>>, vector<1x256xf32>
        %cst_21 = arith.constant 0.001953125 : f32
        %43 = vector.broadcast %cst_21 : f32 to vector<1x256xf32>
        %44 = arith.mulf %42, %43 : vector<1x256xf32>
        %45 = arith.mulf %41, %41 : vector<1x256xf32>
        %46 = arith.subf %44, %45 : vector<1x256xf32>
        %cst_22 = arith.constant 0.000000e+00 : f32
        %47 = vector.broadcast %cst_22 : f32 to vector<1x256xf32>
        %48 = arith.maximumf %46, %47 : vector<1x256xf32>
        %c0_23 = arith.constant 0 : index
        %c0_24 = arith.constant 0 : index
        %49 = vector.load %arg4[%c0_23, %c0_24] : memref<2x256xf32, #tpu.memory_space<vmem>>, vector<1x256xf32>
        %cst_25 = arith.constant 9.99999974E-6 : f32
        %50 = vector.broadcast %cst_25 : f32 to vector<1x256xf32>
        %51 = arith.addf %48, %50 : vector<1x256xf32>
        %52 = math.rsqrt %51 : vector<1x256xf32>
        %53 = arith.mulf %49, %52 : vector<1x256xf32>
        %c1 = arith.constant 1 : index
        %c0_26 = arith.constant 0 : index
        %54 = vector.load %arg4[%c1, %c0_26] : memref<2x256xf32, #tpu.memory_space<vmem>>, vector<1x256xf32>
        %55 = arith.mulf %41, %53 : vector<1x256xf32>
        %56 = arith.subf %54, %55 : vector<1x256xf32>
        %c0_27 = arith.constant 0 : index
        %c0_28 = arith.constant 0 : index
        %57 = vector.load %arg7[%c0_27, %c0_28] : memref<1x256xf32, #tpu.memory_space<vmem>>, vector<1x256xf32>
        tpu.vector_store %arg7[%c0_27, %c0_28], %53 {strides = array<i32>} : memref<1x256xf32, #tpu.memory_space<vmem>>, vector<1x256xf32>,
        %c0_29 = arith.constant 0 : index
        %c0_30 = arith.constant 0 : index
        %58 = vector.load %arg8[%c0_29, %c0_30] : memref<1x256xf32, #tpu.memory_space<vmem>>, vector<1x256xf32>
        tpu.vector_store %arg8[%c0_29, %c0_30], %56 {strides = array<i32>} : memref<1x256xf32, #tpu.memory_space<vmem>>, vector<1x256xf32>,
      } else {
      }
      %15 = arith.index_cast %arg1 : i32 to index
      %c0 = arith.constant 0 : index
      %c0_4 = arith.constant 0 : index
      %16 = vector.load %arg9[%15, %c0, %c0_4] : memref<2x256x256xbf16, #tpu.memory_space<vmem>>, vector<1x256x256xbf16>
      %17 = vector.shape_cast %16 : vector<1x256x256xbf16> to vector<256x256xbf16>
      %18 = arith.extf %17 : vector<256x256xbf16> to vector<256x256xf32>
      %c0_5 = arith.constant 0 : index
      %c0_6 = arith.constant 0 : index
      %19 = vector.load %arg7[%c0_5, %c0_6] : memref<1x256xf32, #tpu.memory_space<vmem>>, vector<1x256xf32>
      %20 = vector.broadcast %19 : vector<1x256xf32> to vector<256x256xf32>
      %21 = arith.mulf %18, %20 : vector<256x256xf32>
      %c0_7 = arith.constant 0 : index
      %c0_8 = arith.constant 0 : index
      %22 = vector.load %arg8[%c0_7, %c0_8] : memref<1x256xf32, #tpu.memory_space<vmem>>, vector<1x256xf32>
      %23 = vector.broadcast %22 : vector<1x256xf32> to vector<256x256xf32>
      %24 = arith.addf %21, %23 : vector<256x256xf32>
      %cst = arith.constant 0.000000e+00 : f32
      %25 = vector.broadcast %cst : f32 to vector<256x256xf32>
      %26 = arith.maximumf %24, %25 : vector<256x256xf32>
      %27 = arith.truncf %26 : vector<256x256xf32> to vector<256x256xbf16>
      %c0_9 = arith.constant 0 : index
      %c0_10 = arith.constant 0 : index
      %28 = vector.load %arg5[%c0_9, %c0_10] : memref<256x128xbf16, #tpu.memory_space<vmem>>, vector<256x128xbf16>
      %cst_11 = arith.constant dense<0.000000e+00> : vector<256x128xf32>
      %29 = tpu.matmul %27, %28, %cst_11 {dimension_numbers = #tpu.dot_dimension_numbers<[1], [0], [0], [1], [0, 0, 1, 1], [], []>} : vector<256x256xbf16>, vector<256x128xbf16>, vector<256x128xf32> -> vector<256x128xf32>
      %30 = arith.mulf %29, %29 : vector<256x128xf32>
      %cst_12 = arith.constant dense<0.000000e+00> : vector<256xf32>
      %31 = vector.multi_reduction <add>, %30, %cst_12 [1] : vector<256x128xf32> to vector<256xf32>
      %32 = vector.shape_cast %31 : vector<256xf32> to vector<256x1xf32>
      %cst_13 = arith.constant 1.000000e-24 : f32
      %33 = vector.broadcast %cst_13 : f32 to vector<256x1xf32>
      %34 = arith.maximumf %32, %33 : vector<256x1xf32>
      %35 = math.rsqrt %34 : vector<256x1xf32>
      %36 = vector.broadcast %35 : vector<256x1xf32> to vector<256x128xf32>
      %37 = arith.mulf %29, %36 : vector<256x128xf32>
      %c0_14 = arith.constant 0 : index
      %c0_15 = arith.constant 0 : index
      %38 = vector.load %arg6[%c0_14, %c0_15] : memref<256x128xf32, #tpu.memory_space<vmem>>, vector<256x128xf32>
      tpu.vector_store %arg6[%c0_14, %c0_15], %37 {strides = array<i32>} : memref<256x128xf32, #tpu.memory_space<vmem>>, vector<256x128xf32>,
    } else {
    }
    return
  }
  func.func @transform_0(%arg0: i32, %arg1: i32) -> (i32, i32) {
    %c1_i32 = arith.constant 1 : i32
    %0 = arith.subi %c1_i32, %arg0 : i32
    %1 = arith.muli %0, %arg1 : i32
    %c1_i32_0 = arith.constant 1 : i32
    %2 = arith.muli %arg0, %c1_i32_0 : i32
    %3 = arith.addi %1, %2 : i32
    %c0_i32 = arith.constant 0 : i32
    %c0_i32_1 = arith.constant 0 : i32
    return %3, %c0_i32 : i32, i32
  }
  func.func @transform_1(%arg0: i32, %arg1: i32) -> (i32, i32) {
    %c0_i32 = arith.constant 0 : i32
    %c0_i32_0 = arith.constant 0 : i32
    %c0_i32_1 = arith.constant 0 : i32
    return %c0_i32, %c0_i32_0 : i32, i32
  }
  func.func @transform_2(%arg0: i32, %arg1: i32) -> (i32, i32) {
    %c0_i32 = arith.constant 0 : i32
    %c0_i32_0 = arith.constant 0 : i32
    %c0_i32_1 = arith.constant 0 : i32
    return %c0_i32, %c0_i32_0 : i32, i32
  }
  func.func @transform_3(%arg0: i32, %arg1: i32) -> (i32, i32) {
    %c0_i32 = arith.constant 0 : i32
    %c0_i32_0 = arith.constant 0 : i32
    %c0_i32_1 = arith.constant 0 : i32
    return %c0_i32, %c0_i32_0 : i32, i32
  }
  func.func @transform_4(%arg0: i32, %arg1: i32) -> (i32, i32) {
    %0 = arith.muli %arg1, %arg0 : i32
    %c0_i32 = arith.constant 0 : i32
    %c0_i32_0 = arith.constant 0 : i32
    return %0, %c0_i32 : i32, i32
  }
}

</mosaic_0001>

<bundles_post_ra>
// kernel: projection_head.1
= control target key start
LH: loop header
LB: loop body
LE: loop exit
PB: predicated region body
PF: predicated region fallthrough
CT: control target
= control target key end

     0   :  { %9 = vsyncpa [#allocation6], 0  ;;  %s4414_s0 = inlined_call_operand.vmem [shape: bf16[512,256], index: 0, kind: input, shape index: {}]   ;;  %s4415_s1 = inlined_call_operand.vmem [shape: bf16[256,256], index: 1, kind: input, shape index: {}]   ;;  %s4416_s2 = inlined_call_operand.vmem [shape: f32[2,256], index: 2, kind: input, shape index: {}]   ;;  %s4417_s3 = inlined_call_operand.vmem [shape: bf16[256,128], index: 3, kind: input, shape index: {}]   ;;  %s4418_s4 = inlined_call_operand.hbm [shape: f32[512,128], index: 4, kind: output, shape index: {}]  }
   0x1   :  { %11 = vsyncpa [#allocation6 + $0x1], 0  ;;  %s3232_s15 = smov 0   ;;  %s3234_s16 = smov 0  }
   0x2   :  { %s3236_s17 = smov 0   ;;  %s3238_s18 = smov 0  }
   0x3   :  { %s3240_s19 = smov 0   ;;  %s3242_s20 = smov 0  }
   0x4   :  { %s3244_s21 = smov 0   ;;  %s3246_s22 = smov 0  }
   0x5 LB: > { %s2523_s23 = sadd.s32 4294967295, %s3200_s22   ;;  %s2524_s24 = sadd.s32 4294967294, %s3200_s22   ;;  %s3200_s22 = sphi %s3246_s22, %s17_s22   ;;  %s3196_s21 = sphi %s3244_s21, %s4528_s21   ;;  %s3192_s20 = sphi %s3242_s20, %s4527_s20   ;;  %s3188_s19 = sphi %s3240_s19, %s4526_s19   ;;  %s3184_s18 = sphi %s3238_s18, %s4525_s18   ;;  %s3180_s17 = sphi %s3236_s17, %s4524_s17   ;;  %s3176_s16 = sphi %s3234_s16, %s4523_s16   ;;  %s3172_s15 = sphi %s3232_s15, %s4522_s15  }
   0x6   : > { %s26_s25 = sadd.s32 1, %s3192_s20  ;;  %s29_s26 = sadd.s32 1, %s3196_s21 }
   0x7   : > { %p27_p0 = scmp.ge.s32.totalorder %s26_s25, 2  ;;  %s128_s27 = smul.u32 %s3192_s20, %s3196_s21 }
   0x8   : > { %p143_p1 = scmp.ne.s32.totalorder %s3180_s17, %s3176_s16  ;;  %p144_p2 = scmp.eq.s32.totalorder %s2523_s23, 3 }
   0x9   : > { %s4530_s25 = smov (%p27_p0, %s26_s25), 0  ;;  %s4532_s26 = smov (!%p27_p0, %s29_s26), %s3196_s21 }
   0xa   : > { %p149_p3 = scmp.ne.s32.totalorder %s3176_s16, %s3172_s15  ;;  %p31_p4 = scmp.ge.s32.totalorder %s4532_s26, 2 }
   0xb   : > { %p150_p5 = scmp.eq.s32.totalorder %s2524_s24, 3  ;;  %p3285_p6 = por %p144_p2, %p143_p1 }
   0xc   : > { %p2527_p7 = scmp.ge.s32.totalorder %s3200_s22, 1  ;;  %s4534_s26 = smov (%p31_p4, %s4532_s26), 0 }
   0xd   : > { %p3292_p8 = por %p150_p5, %p149_p3  ;;  %p193_p9 = scmp.lt.s32.totalorder %s3200_s22, 5 }
   0xe   : > { %s129_s30 = smul.u32 %s4534_s26, %s4530_s25  ;;  %s133_s6 = sadd.s32 1, %s3180_s17 }
   0xf   : > { %p194_p10 = pnand %p2527_p7, %p193_p9 }
  0x10   : > { %s130_s5 = ssub.s32 %s128_s27, %s129_s30 }
  0x11   : > { %p131_p11 = scmp.eq.s32.totalorder %s130_s5, 0  ;;  %197 = sbr.rel (%p194_p10) target bundleno = 960 (0x3c0), region = 36 }
  0x13   : > { %s3301_s7 = scalar_select %p131_p11, %s3180_s17, %s133_s6  }
  0x16   : > { %s220_s8 = sand.u32 1, %s3176_s16   ;;  %s223_s9 = ssub.s32 1, %s3188_s19  ;;  %v4419_v0 = vlaneseq }
  0x17   : > { %s3307_s10 = sshll.u32 %s220_s8, 8  ;;  %s224_s11 = smul.u32 %s3184_s18, %s223_s9 }
  0x18   : > { %s3311_s12 = sshll.u32 %s3184_s18, 8  ;;  %v3314_v1 = vshrl.u32 %v4419_v0, 7  ;;  %s3486_s5 = scalar_lea.vmem [#allocation5], %s3307_s10 }
  0x19   : > { %s225_s13 = sadd.s32 %s3188_s19, %s224_s11  ;;  %v3318_v2 = vstv %s3311_s12  ;;  %p2533_p13 = scmp.ne.s32.totalorder %s3188_s19, 0 }
  0x1a   : > { %4451 = vst [vmem:[#allocation8_spill] sm:$0xff] %v3314_v1  ;;  %s2529_s14 = sshll.u32 %s225_s13, 5  ;;  %v242_v3 = vadd.s32 8, %v3314_v1  ;;  %v243_v4 = vadd.s32 16, %v3314_v1  ;;  %v244_v5 = vadd.s32 24, %v3314_v1  ;;  %v245_v6 = vadd.s32 32, %v3314_v1 }
  0x1b   : > { %p227_p12 = scmp.lt.s32.totalorder %s2529_s14, 63  ;;  %v246_v7 = vadd.s32 40, %v3314_v1  ;;  %v247_v8 = vadd.s32 48, %v3314_v1  ;;  %v248_v9 = vadd.s32 56, %v3314_v1  ;;  %v249_v10 = vadd.s32 64, %v3314_v1 }
  0x1c   : > { %v250_v11 = vadd.s32 72, %v3314_v1  ;;  %v251_v12 = vadd.s32 80, %v3314_v1  ;;  %v252_v13 = vadd.s32 88, %v3314_v1  ;;  %v253_v14 = vadd.s32 96, %v3314_v1 }
  0x1d   : > { %s4536_s14 = smov (!%p227_p12, %s2529_s14), 63  ;;  %v254_v15 = vadd.s32 104, %v3314_v1  ;;  %v255_v16 = vadd.s32 112, %v3314_v1  ;;  %v256_v17 = vadd.s32 120, %v3314_v1  ;;  %v257_v18 = vadd.s32 128, %v3314_v1 }
  0x1e   : > { %v258_v19 = vadd.s32 136, %v3314_v1  ;;  %v259_v20 = vadd.s32 144, %v3314_v1  ;;  %v260_v21 = vadd.s32 152, %v3314_v1  ;;  %v261_v22 = vadd.s32 160, %v3314_v1  ;;  %s2659_s23 = sshll.u32 %s4536_s14, 3 }
  0x1f   : > { %v262_v23 = vadd.s32 168, %v3314_v1  ;;  %v263_v24 = vadd.s32 176, %v3314_v1  ;;  %v264_v25 = vadd.s32 184, %v3314_v1  ;;  %v265_v26 = vadd.s32 192, %v3314_v1  ;;  %s3347_s30 = scalar_lea.vmem %s4414_s0, %s2659_s23 }
  0x20   : > { %v266_v27 = vadd.s32 200, %v3314_v1  ;;  %v267_v28 = vadd.s32 208, %v3314_v1  ;;  %v268_v29 = vadd.s32 216, %v3314_v1  ;;  %v269_v30 = vadd.s32 224, %v3314_v1 }
  0x21   : > { %v270_v31 = vadd.s32 232, %v3314_v1  ;;  %v271_v32 = vadd.s32 240, %v3314_v1  ;;  %v272_v33 = vadd.s32 248, %v3314_v1  ;;  %v3358_v34 = vadd.s32 %v3318_v2, %v3314_v1 }
  0x22   : > { %v3361_v35 = vadd.s32 %v3318_v2, %v242_v3  ;;  %v3364_v36 = vadd.s32 %v3318_v2, %v243_v4  ;;  %v3367_v37 = vadd.s32 %v3318_v2, %v244_v5  ;;  %v3370_v38 = vadd.s32 %v3318_v2, %v245_v6 }
  0x23   : > { %v3373_v39 = vadd.s32 %v3318_v2, %v246_v7  ;;  %v3376_v40 = vadd.s32 %v3318_v2, %v247_v8  ;;  %v3379_v41 = vadd.s32 %v3318_v2, %v248_v9  ;;  %v3382_v42 = vadd.s32 %v3318_v2, %v249_v10 }
  0x24   : > { %v3385_v43 = vadd.s32 %v3318_v2, %v250_v11  ;;  %v3388_v44 = vadd.s32 %v3318_v2, %v251_v12  ;;  %v3391_v45 = vadd.s32 %v3318_v2, %v252_v13  ;;  %v3394_v46 = vadd.s32 %v3318_v2, %v253_v14 }
  0x25   : > { %v3397_v47 = vadd.s32 %v3318_v2, %v254_v15  ;;  %v3400_v48 = vadd.s32 %v3318_v2, %v255_v16  ;;  %v3403_v49 = vadd.s32 %v3318_v2, %v256_v17  ;;  %v3406_v50 = vadd.s32 %v3318_v2, %v257_v18 }
  0x26   : > { %v3409_v51 = vadd.s32 %v3318_v2, %v258_v19  ;;  %v3412_v52 = vadd.s32 %v3318_v2, %v259_v20  ;;  %v3415_v53 = vadd.s32 %v3318_v2, %v260_v21  ;;  %v3418_v54 = vadd.s32 %v3318_v2, %v261_v22 }
  0x27   : > { %v3421_v55 = vadd.s32 %v3318_v2, %v262_v23  ;;  %v3424_v56 = vadd.s32 %v3318_v2, %v263_v24  ;;  %v3427_v57 = vadd.s32 %v3318_v2, %v264_v25  ;;  %v3430_v58 = vadd.s32 %v3318_v2, %v265_v26 }
  0x28   : > { %v3433_v59 = vadd.s32 %v3318_v2, %v266_v27  ;;  %v3436_v60 = vadd.s32 %v3318_v2, %v267_v28  ;;  %v3439_v61 = vadd.s32 %v3318_v2, %v268_v29  ;;  %v3442_v62 = vadd.s32 %v3318_v2, %v269_v30 }
  0x29   : > { %4452 = vst [vmem:[#allocation9_spill] sm:$0xff] %v3421_v55  ;;  %4453 = vst [vmem:[#allocation10_spill] sm:$0xff] %v3424_v56  ;;  %v3445_v63 = vadd.s32 %v3318_v2, %v270_v31  ;;  %v3448_v3 = vadd.s32 %v3318_v2, %v271_v32  ;;  %v3451_v4 = vadd.s32 %v3318_v2, %v272_v33  ;;  %vm306_vm0 = vcmp.lt.s32.totalorder %v3358_v34, 512 }
  0x2a   : > { %4454 = vst [vmem:[#allocation11_spill] sm:$0xff] %v3427_v57  ;;  %4455 = vst [vmem:[#allocation12_spill] sm:$0xff] %v3430_v58  ;;  %vm307_vm1 = vcmp.lt.s32.totalorder %v3361_v35, 512  ;;  %vm308_vm2 = vcmp.lt.s32.totalorder %v3364_v36, 512  ;;  %vm309_vm3 = vcmp.lt.s32.totalorder %v3367_v37, 512  ;;  %vm310_vm4 = vcmp.lt.s32.totalorder %v3370_v38, 512 }
  0x2b   : > { %4456 = vst [vmem:[#allocation13_spill] sm:$0xff] %v3433_v59  ;;  %4457 = vst [vmem:[#allocation14_spill] sm:$0xff] %v3436_v60  ;;  %vm311_vm5 = vcmp.lt.s32.totalorder %v3373_v39, 512  ;;  %vm328_vm12 = vcmp.lt.s32.totalorder %v3424_v56, 512  ;;  %vm329_vm13 = vcmp.lt.s32.totalorder %v3427_v57, 512  ;;  %vm330_vm14 = vcmp.lt.s32.totalorder %v3430_v58, 512 }
  0x2c   : > { %4458 = vst [vmem:[#allocation15_spill] sm:$0xff] %v3439_v61  ;;  %4459 = vst [vmem:[#allocation16_spill] sm:$0xff] %v3442_v62  ;;  %vm331_vm15 = vcmp.lt.s32.totalorder %v3433_v59, 512  ;;  %vm333_vm7 = vcmp.lt.s32.totalorder %v3439_v61, 512  ;;  %vm334_vm8 = vcmp.lt.s32.totalorder %v3442_v62, 512  ;;  %vm335_vm9 = vcmp.lt.s32.totalorder %v3445_v63, 512 }
  0x2d   : > { %4460 = vst [vmem:[#allocation17_spill] sm:$0xff] %v3445_v63  ;;  %4461 = vst [vmem:[#allocation18_spill] sm:$0xff] %v3448_v3  ;;  %vm336_vm10 = vcmp.lt.s32.totalorder %v3448_v3, 512  ;;  %vm337_vm11 = vcmp.lt.s32.totalorder %v3451_v4, 512  ;;  %341 = sbr.rel (%p2533_p13) target bundleno = 438 (0x1b6), region = 40 }
  0x2e   : > { %4462 = vst [vmem:[#allocation19_spill] sm:$0xff] %v3451_v4 }
  0x32   : > { %p2534_p0 = scmp.ne.s32.totalorder %s3184_s18, 0 }
  0x34   : > { %345 = sbr.rel (%p2534_p0) target bundleno = 59 (0x3b), region = 44 }
  0x39   : > { %vm348_vm6 = vcmp.lt.s32.totalorder %v4419_v0, 256  ;;  %v3202_v2 = vmov 0.0  }
  0x3a   : > { %350 = vst.msk [vmem:[#allocation2] sm:$0x3] %vm348_vm6, %v3202_v2  ;;  %351 = vst.msk [vmem:[#allocation3] sm:$0x3] %vm348_vm6, %v3202_v2 }
  0x3b PF: > { %v2930_v5 = vld [vmem:[%s4415_s1 + $0x74] ss:$8 sps:$4 sm:$0xff]   ;;  %v2932_v6 = vld [vmem:[%s4415_s1 + $0x70] ss:$8 sps:$4 sm:$0xff]   ;;  %v2933_v7 = vld [vmem:[%s4415_s1 + $0x64] ss:$8 sps:$4 sm:$0xff]  }
  0x3c   : > { %736 = vmatprep.subr.bf16.mxu0 %v2930_v5  ;;  %2807 = vmatprep.subr.bf16.mxu1 %v2930_v5  ;;  %v2935_v8 = vld [vmem:[%s4415_s1 + $0x60] ss:$8 sps:$4 sm:$0xff]   ;;  %v2936_v9 = vld [vmem:[%s4415_s1 + $0x54] ss:$8 sps:$4 sm:$0xff]   ;;  %v2938_v10 = vld [vmem:[%s4415_s1 + $0x50] ss:$8 sps:$4 sm:$0xff]  }
  0x3d   : > { %737 = vmatpush1.bf16.msra.mxu0 %v2932_v6  ;;  %2823 = vmatpush1.bf16.msra.mxu1 %v2932_v6  ;;  %v2939_v11 = vld [vmem:[%s4415_s1 + $0x44] ss:$8 sps:$4 sm:$0xff]   ;;  %v2941_v12 = vld [vmem:[%s4415_s1 + $0x40] ss:$8 sps:$4 sm:$0xff]   ;;  %v2942_v13 = vld [vmem:[%s4415_s1 + $0x34] ss:$8 sps:$4 sm:$0xff]  }
  0x3e   : > { %738 = vmatprep.subr.bf16.mxu0 %v2933_v7  ;;  %2808 = vmatprep.subr.bf16.mxu1 %v2933_v7  ;;  %v2944_v14 = vld [vmem:[%s4415_s1 + $0x30] ss:$8 sps:$4 sm:$0xff]   ;;  %v2945_v15 = vld [vmem:[%s4415_s1 + $0x24] ss:$8 sps:$4 sm:$0xff]   ;;  %v2947_v16 = vld [vmem:[%s4415_s1 + $0x20] ss:$8 sps:$4 sm:$0xff]  }
  0x3f   : > { %v2948_v17 = vld [vmem:[%s4415_s1 + $0x14] ss:$8 sps:$4 sm:$0xff]   ;;  %v2980_v18 = vld [vmem:[%s3347_s30 + $0x4] ss:$8 sps:$4 sm:$0xff]   ;;  %v2950_v19 = vld [vmem:[%s4415_s1 + $0x10] ss:$8 sps:$4 sm:$0xff]  }
  0x40   : > { %v2951_v20 = vld [vmem:[%s4415_s1 + $0x4] ss:$8 sps:$4 sm:$0xff]   ;;  %768 = vmatprep.mubr.bf16.mxu0 %v2980_v18  ;;  %v2953_v21 = vld [vmem:[%s4415_s1] ss:$8 sps:$4 sm:$0xff]   ;;  %v2954_v23 = vld [vmem:[%s4415_s1 + $0xf4] ss:$8 sps:$4 sm:$0xff]  }
  0x41   : > { %739 = vmatpush1.bf16.msra.mxu0 %v2935_v8  ;;  %2824 = vmatpush1.bf16.msra.mxu1 %v2935_v8  ;;  %v2992_v22 = vld [vmem:[%s3347_s30 + $0x84] ss:$8 sps:$4 sm:$0xff]   ;;  %v2956_v24 = vld [vmem:[%s4415_s1 + $0xf0] ss:$8 sps:$4 sm:$0xff]   ;;  %v2959_v26 = vld [vmem:[%s4415_s1 + $0xe0] ss:$8 sps:$4 sm:$0xff]  }
  0x42   : > { %740 = vmatprep.subr.bf16.mxu0 %v2936_v9  ;;  %2809 = vmatprep.subr.bf16.mxu1 %v2936_v9  ;;  %v2957_v25 = vld [vmem:[%s4415_s1 + $0xe4] ss:$8 sps:$4 sm:$0xff]   ;;  %v2960_v27 = vld [vmem:[%s4415_s1 + $0xd4] ss:$8 sps:$4 sm:$0xff]   ;;  %v2962_v28 = vld [vmem:[%s4415_s1 + $0xd0] ss:$8 sps:$4 sm:$0xff]  }
  0x43   : > { %848 = vmatprep.mubr.bf16.mxu1 %v2992_v22  ;;  %v2963_v29 = vld [vmem:[%s4415_s1 + $0xc4] ss:$8 sps:$4 sm:$0xff]   ;;  %v2965_v30 = vld [vmem:[%s4415_s1 + $0xc0] ss:$8 sps:$4 sm:$0xff]   ;;  %v2966_v31 = vld [vmem:[%s4415_s1 + $0xb4] ss:$8 sps:$4 sm:$0xff]  }
  0x44   : > { %v2968_v32 = vld [vmem:[%s4415_s1 + $0xb0] ss:$8 sps:$4 sm:$0xff]   ;;  %v2969_v33 = vld [vmem:[%s4415_s1 + $0xa4] ss:$8 sps:$4 sm:$0xff]   ;;  %v2971_v2 = vld [vmem:[%s4415_s1 + $0xa0] ss:$8 sps:$4 sm:$0xff]  }
  0x45   : > { %741 = vmatpush1.bf16.msra.mxu0 %v2938_v10  ;;  %2825 = vmatpush1.bf16.msra.mxu1 %v2938_v10  ;;  %v2972_v5 = vld [vmem:[%s4415_s1 + $0x94] ss:$8 sps:$4 sm:$0xff]   ;;  %v2974_v6 = vld [vmem:[%s4415_s1 + $0x90] ss:$8 sps:$4 sm:$0xff]   ;;  %v2975_v7 = vld [vmem:[%s4415_s1 + $0x84] ss:$8 sps:$4 sm:$0xff]  }
  0x46   : > { %742 = vmatprep.subr.bf16.mxu0 %v2939_v11  ;;  %2810 = vmatprep.subr.bf16.mxu1 %v2939_v11  ;;  %v2977_v8 = vld [vmem:[%s4415_s1 + $0x80] ss:$8 sps:$4 sm:$0xff]   ;;  %v2981_v11 = vld [vmem:[%s3347_s30 + $0x14] ss:$8 sps:$4 sm:$0xff]   ;;  %v3010_v22 = vld [vmem:[%s3347_s30 + $0xb0] ss:$8 sps:$4 sm:$0xff]  }
  0x47   : > { %v2978_v9 = vld [vmem:[%s3347_s30] ss:$8 sps:$4 sm:$0xff]   ;;  %s3628_s9 = scalar_lea.vmem [#allocation4], %s3311_s12  ;;  %vm4474_vm6 = vcmp.lt.s32.totalorder %v3385_v43, 512 }
  0x48   : > { %v2990_v10 = vld [vmem:[%s3347_s30 + $0x80] ss:$8 sps:$4 sm:$0xff]  }
  0x49   : > { %743 = vmatpush1.bf16.msra.mxu0 %v2941_v12  ;;  %2826 = vmatpush1.bf16.msra.mxu1 %v2941_v12  ;;  %v2996_v12 = vld [vmem:[%s3347_s30 + $0x94] ss:$8 sps:$4 sm:$0xff]   ;;  %v3004_v18 = vld [vmem:[%s3347_s30 + $0xa0] ss:$8 sps:$4 sm:$0xff]  }
  0x4a   : > { %744 = vmatprep.subr.bf16.mxu0 %v2942_v13  ;;  %2811 = vmatprep.subr.bf16.mxu1 %v2942_v13  ;;  %v2983_v13 = vld [vmem:[%s3347_s30 + $0x10] ss:$8 sps:$4 sm:$0xff]  }
  0x4d   : > { %745 = vmatpush1.bf16.msra.mxu0 %v2944_v14  ;;  %2827 = vmatpush1.bf16.msra.mxu1 %v2944_v14  ;;  %v2998_v14 = vld [vmem:[%s3347_s30 + $0x90] ss:$8 sps:$4 sm:$0xff]  }
  0x4e   : > { %746 = vmatprep.subr.bf16.mxu0 %v2945_v15  ;;  %2812 = vmatprep.subr.bf16.mxu1 %v2945_v15  ;;  %v2984_v15 = vld [vmem:[%s3347_s30 + $0x24] ss:$8 sps:$4 sm:$0xff]  }
  0x51   : > { %747 = vmatpush1.bf16.msra.mxu0 %v2947_v16  ;;  %2828 = vmatpush1.bf16.msra.mxu1 %v2947_v16  ;;  %v3002_v16 = vld [vmem:[%s3347_s30 + $0xa4] ss:$8 sps:$4 sm:$0xff]  }
  0x52   : > { %748 = vmatprep.subr.bf16.mxu0 %v2948_v17  ;;  %2813 = vmatprep.subr.bf16.mxu1 %v2948_v17  ;;  %v2986_v17 = vld [vmem:[%s3347_s30 + $0x20] ss:$8 sps:$4 sm:$0xff]  }
  0x55   : > { %749 = vmatpush1.bf16.msra.mxu0 %v2950_v19  ;;  %2829 = vmatpush1.bf16.msra.mxu1 %v2950_v19  ;;  %v2987_v19 = vld [vmem:[%s3347_s30 + $0x34] ss:$8 sps:$4 sm:$0xff]  }
  0x56   : > { %750 = vmatprep.subr.bf16.mxu0 %v2951_v20  ;;  %2814 = vmatprep.subr.bf16.mxu1 %v2951_v20  ;;  %v3008_v20 = vld [vmem:[%s3347_s30 + $0xb4] ss:$8 sps:$4 sm:$0xff]  }
  0x59   : > { %751 = vmatpush1.bf16.msra.mxu0 %v2953_v21  ;;  %2830 = vmatpush1.bf16.msra.mxu1 %v2953_v21  ;;  %v2989_v21 = vld [vmem:[%s3347_s30 + $0x30] ss:$8 sps:$4 sm:$0xff]  }
  0x5a   : > { %752 = vmatprep.subr.bf16.mxu0 %v2954_v23  ;;  %2815 = vmatprep.subr.bf16.mxu1 %v2954_v23  ;;  %v2993_v23 = vld [vmem:[%s3347_s30 + $0x44] ss:$8 sps:$4 sm:$0xff]  }
  0x5d   : > { %753 = vmatpush2.bf16.msra.mxu0 %v2956_v24  ;;  %2831 = vmatpush2.bf16.msra.mxu1 %v2956_v24  ;;  %v3014_v24 = vld [vmem:[%s3347_s30 + $0xc4] ss:$8 sps:$4 sm:$0xff]  }
  0x5e   : > { %754 = vmatprep.subr.bf16.mxu0 %v2957_v25  ;;  %2816 = vmatprep.subr.bf16.mxu1 %v2957_v25  ;;  %v2995_v25 = vld [vmem:[%s3347_s30 + $0x40] ss:$8 sps:$4 sm:$0xff]  }
  0x61   : > { %755 = vmatpush2.bf16.msra.mxu0 %v2959_v26  ;;  %2832 = vmatpush2.bf16.msra.mxu1 %v2959_v26  ;;  %v3016_v26 = vld [vmem:[%s3347_s30 + $0xc0] ss:$8 sps:$4 sm:$0xff]  }
  0x62   : > { %756 = vmatprep.subr.bf16.mxu0 %v2960_v27  ;;  %2817 = vmatprep.subr.bf16.mxu1 %v2960_v27  ;;  %v2999_v27 = vld [vmem:[%s3347_s30 + $0x54] ss:$8 sps:$4 sm:$0xff]  }
  0x65   : > { %757 = vmatpush2.bf16.msra.mxu0 %v2962_v28  ;;  %2833 = vmatpush2.bf16.msra.mxu1 %v2962_v28  ;;  %v3017_v28 = vld [vmem:[%s3347_s30 + $0xd4] ss:$8 sps:$4 sm:$0xff]  }
  0x66   : > { %758 = vmatprep.subr.bf16.mxu0 %v2963_v29  ;;  %2818 = vmatprep.subr.bf16.mxu1 %v2963_v29  ;;  %v3001_v29 = vld [vmem:[%s3347_s30 + $0x50] ss:$8 sps:$4 sm:$0xff]  }
  0x69   : > { %759 = vmatpush2.bf16.msra.mxu0 %v2965_v30  ;;  %2834 = vmatpush2.bf16.msra.mxu1 %v2965_v30  ;;  %v3019_v30 = vld [vmem:[%s3347_s30 + $0xd0] ss:$8 sps:$4 sm:$0xff]  }
  0x6a   : > { %760 = vmatprep.subr.bf16.mxu0 %v2966_v31  ;;  %2819 = vmatprep.subr.bf16.mxu1 %v2966_v31  ;;  %v3005_v31 = vld [vmem:[%s3347_s30 + $0x64] ss:$8 sps:$4 sm:$0xff]  }
  0x6d   : > { %761 = vmatpush2.bf16.msra.mxu0 %v2968_v32  ;;  %2835 = vmatpush2.bf16.msra.mxu1 %v2968_v32  ;;  %v3020_v32 = vld [vmem:[%s3347_s30 + $0xe4] ss:$8 sps:$4 sm:$0xff]  }
  0x6e   : > { %762 = vmatprep.subr.bf16.mxu0 %v2969_v33  ;;  %2820 = vmatprep.subr.bf16.mxu1 %v2969_v33  ;;  %v3007_v33 = vld [vmem:[%s3347_s30 + $0x60] ss:$8 sps:$4 sm:$0xff]  }
  0x71   : > { %763 = vmatpush2.bf16.msra.mxu0 %v2971_v2  ;;  %2836 = vmatpush2.bf16.msra.mxu1 %v2971_v2  ;;  %v3022_v2 = vld [vmem:[%s3347_s30 + $0xe0] ss:$8 sps:$4 sm:$0xff]  }
  0x72   : > { %764 = vmatprep.subr.bf16.mxu0 %v2972_v5  ;;  %2821 = vmatprep.subr.bf16.mxu1 %v2972_v5  ;;  %v3011_v5 = vld [vmem:[%s3347_s30 + $0x74] ss:$8 sps:$4 sm:$0xff]  }
  0x75   : > { %765 = vmatpush2.bf16.msra.mxu0 %v2974_v6  ;;  %2837 = vmatpush2.bf16.msra.mxu1 %v2974_v6  ;;  %v3023_v6 = vld [vmem:[%s3347_s30 + $0xf4] ss:$8 sps:$4 sm:$0xff]  }
  0x76   : > { %766 = vmatprep.subr.bf16.mxu0 %v2975_v7  ;;  %2822 = vmatprep.subr.bf16.mxu1 %v2975_v7  ;;  %v3013_v7 = vld [vmem:[%s3347_s30 + $0x70] ss:$8 sps:$4 sm:$0xff]  }
  0x79   : > { %767 = vmatpush2.bf16.msra.mxu0 %v2977_v8  ;;  %2838 = vmatpush2.bf16.msra.mxu1 %v2977_v8  ;;  %v3025_v8 = vld [vmem:[%s3347_s30 + $0xf0] ss:$8 sps:$4 sm:$0xff]  }
  0x7c   : > { %769 = vmatmul.mubr.bf16.vlgmr.msra.gmra.mxu0 %v2978_v9  ;;  %849 = vmatmul.mubr.bf16.vlgmr.msra.gmra.mxu1 %v2990_v10 }
  0x7d   : > { %778 = vmatprep.mubr.bf16.mxu0 %v2981_v11  ;;  %858 = vmatprep.mubr.bf16.mxu1 %v2996_v12 }
  0x84   : > { %779 = vmatmul.mubr.bf16.gmra.mxu0 %v2983_v13  ;;  %859 = vmatmul.mubr.bf16.gmra.mxu1 %v2998_v14 }
  0x85   : > { %788 = vmatprep.mubr.bf16.mxu0 %v2984_v15  ;;  %868 = vmatprep.mubr.bf16.mxu1 %v3002_v16 }
  0x8c   : > { %789 = vmatmul.mubr.bf16.gmra.mxu0 %v2986_v17  ;;  %869 = vmatmul.mubr.bf16.gmra.mxu1 %v3004_v18 }
  0x8d   : > { %798 = vmatprep.mubr.bf16.mxu0 %v2987_v19  ;;  %878 = vmatprep.mubr.bf16.mxu1 %v3008_v20 }
  0x94   : > { %799 = vmatmul.mubr.bf16.gmra.mxu0 %v2989_v21  ;;  %879 = vmatmul.mubr.bf16.gmra.mxu1 %v3010_v22 }
  0x95   : > { %808 = vmatprep.mubr.bf16.mxu0 %v2993_v23  ;;  %888 = vmatprep.mubr.bf16.mxu1 %v3014_v24 }
  0x9c   : > { %809 = vmatmul.mubr.bf16.gmra.mxu0 %v2995_v25  ;;  %889 = vmatmul.mubr.bf16.gmra.mxu1 %v3016_v26 }
  0x9d   : > { %818 = vmatprep.mubr.bf16.mxu0 %v2999_v27  ;;  %898 = vmatprep.mubr.bf16.mxu1 %v3017_v28 }
  0xa4   : > { %819 = vmatmul.mubr.bf16.gmra.mxu0 %v3001_v29  ;;  %899 = vmatmul.mubr.bf16.gmra.mxu1 %v3019_v30 }
  0xa5   : > { %828 = vmatprep.mubr.bf16.mxu0 %v3005_v31  ;;  %908 = vmatprep.mubr.bf16.mxu1 %v3020_v32 }
  0xac   : > { %829 = vmatmul.mubr.bf16.gmra.mxu0 %v3007_v33  ;;  %909 = vmatmul.mubr.bf16.gmra.mxu1 %v3022_v2 }
  0xad   : > { %838 = vmatprep.mubr.bf16.mxu0 %v3011_v5  ;;  %918 = vmatprep.mubr.bf16.mxu1 %v3023_v6 }
  0xb4   : > { %839 = vmatmul.mubr.bf16.gmra.mxu0 %v3013_v7  ;;  %919 = vmatmul.mubr.bf16.gmra.mxu1 %v3025_v8 }
 0x13c   : > { %v770_v9 = vpop.f32.mrf.mxu0  ;;  %v3619_v10 = vpop.f32.mrf.mxu1 }
 0x13e   : > { %v772_v11 = vpop.f32.mrf.mxu0  ;;  %v3621_v12 = vpop.f32.mrf.mxu1 }
 0x13f   : > { %v2660_v13 = vpack.c.bf16 %v772_v11, %v770_v9  ;;  %v2676_v14 = vpack.c.bf16 %v3621_v12, %v3619_v10  ;;  %v1221_v3 = vsel %vm306_vm0, %v772_v11, 0.0 }
 0x140   : > { %v774_v15 = vpop.f32.mrf.mxu0  ;;  %v3625_v16 = vpop.f32.mrf.mxu1  ;;  %v1385_v11 = vmul.f32 %v1221_v3, %v1221_v3 }
 0x141   : > { %1124 = vst [vmem:[%s3628_s9] sm:$0xff] %v2660_v13  ;;  %1140 = vst [vmem:[%s3628_s9 + $0x80] sm:$0xff] %v2676_v14  ;;  %v1222_v0 = vsel %vm307_vm1, %v774_v15, 0.0 }
 0x142   : > { %v776_v17 = vpop.f32.mrf.mxu0  ;;  %v3632_v18 = vpop.f32.mrf.mxu1 }
 0x143   : > { %v2661_v19 = vpack.c.bf16 %v776_v17, %v774_v15  ;;  %v2677_v20 = vpack.c.bf16 %v3632_v18, %v3625_v16 }
 0x144   : > { %v780_v21 = vpop.f32.mrf.mxu0  ;;  %v3636_v22 = vpop.f32.mrf.mxu1 }
 0x145   : > { %1125 = vst [vmem:[%s3628_s9 + $0x8] sm:$0xff] %v2661_v19  ;;  %1141 = vst [vmem:[%s3628_s9 + $0x88] sm:$0xff] %v2677_v20  ;;  %v1224_v63 = vsel %vm308_vm2, %v780_v21, 0.0 }
 0x146   : > { %v782_v23 = vpop.f32.mrf.mxu0  ;;  %v3640_v24 = vpop.f32.mrf.mxu1  ;;  %v1388_v60 = vmul.f32 %v1224_v63, %v1224_v63 }
 0x147   : > { %v2662_v25 = vpack.c.bf16 %v782_v23, %v780_v21  ;;  %v2678_v26 = vpack.c.bf16 %v3640_v24, %v3636_v22 }
 0x148   : > { %v784_v27 = vpop.f32.mrf.mxu0  ;;  %v3644_v28 = vpop.f32.mrf.mxu1 }
 0x149   : > { %1126 = vst [vmem:[%s3628_s9 + $0x10] sm:$0xff] %v2662_v25  ;;  %1142 = vst [vmem:[%s3628_s9 + $0x90] sm:$0xff] %v2678_v26  ;;  %v1226_v34 = vsel %vm309_vm3, %v784_v27, 0.0 }
 0x14a   : > { %v786_v29 = vpop.f32.mrf.mxu0  ;;  %v3648_v30 = vpop.f32.mrf.mxu1 }
 0x14b   : > { %v2663_v31 = vpack.c.bf16 %v786_v29, %v784_v27  ;;  %v2679_v32 = vpack.c.bf16 %v3648_v30, %v3644_v28  ;;  %v1227_v59 = vsel %vm309_vm3, %v786_v29, 0.0 }
 0x14c   : > { %v790_v33 = vpop.f32.mrf.mxu0  ;;  %v3652_v2 = vpop.f32.mrf.mxu1 }
 0x14d   : > { %1127 = vst [vmem:[%s3628_s9 + $0x18] sm:$0xff] %v2663_v31  ;;  %1143 = vst [vmem:[%s3628_s9 + $0x98] sm:$0xff] %v2679_v32  ;;  %v1228_v57 = vsel %vm310_vm4, %v790_v33, 0.0 }
 0x14e   : > { %v792_v5 = vpop.f32.mrf.mxu0  ;;  %v3656_v6 = vpop.f32.mrf.mxu1 }
 0x14f   : > { %v2664_v7 = vpack.c.bf16 %v792_v5, %v790_v33  ;;  %v2680_v8 = vpack.c.bf16 %v3656_v6, %v3652_v2 }
 0x150   : > { %v794_v13 = vpop.f32.mrf.mxu0  ;;  %v3660_v14 = vpop.f32.mrf.mxu1 }
 0x151   : > { %4463 = vst [vmem:[#allocation20_spill] sm:$0xff] %v3660_v14  ;;  %1128 = vst [vmem:[%s3628_s9 + $0x20] sm:$0xff] %v2664_v7  ;;  %v1220_v7 = vsel %vm306_vm0, %v770_v9, 0.0  ;;  %v1225_v9 = vsel %vm308_vm2, %v782_v23, 0.0  ;;  %vm4468_vm0 = vcmp.lt.s32.totalorder %v3376_v40, 512  ;;  %vm4470_vm2 = vcmp.lt.s32.totalorder %v3379_v41, 512 }
 0x152   : > { %1144 = vst [vmem:[%s3628_s9 + $0xa0] sm:$0xff] %v2680_v8  ;;  %v796_v19 = vpop.f32.mrf.mxu0  ;;  %v3664_v20 = vpop.f32.mrf.mxu1  ;;  %v1223_v8 = vsel %vm307_vm1, %v776_v17, 0.0  ;;  %v1384_v17 = vmul.f32 %v1220_v7, %v1220_v7  ;;  %v1285_v21 = vadd.f32 %v1222_v0, %v1220_v7  ;;  %v1389_v23 = vmul.f32 %v1225_v9, %v1225_v9  ;;  %vm4469_vm1 = vmmov %vm4468_vm0 }
 0x153   : > { %4464 = vst [vmem:[#allocation21_spill] sm:$0xff] %v3664_v20  ;;  %v2665_v25 = vpack.c.bf16 %v796_v19, %v794_v13  ;;  %v2681_v26 = vpack.c.bf16 %v3664_v20, %v3660_v14  ;;  %v1387_v61 = vmul.f32 %v1223_v8, %v1223_v8  ;;  %v1229_v20 = vsel %vm310_vm4, %v792_v5, 0.0  ;;  %vm4471_vm3 = vmmov %vm4470_vm2 }
 0x154   : > { %v800_v31 = vpop.f32.mrf.mxu0  ;;  %v3668_v32 = vpop.f32.mrf.mxu1  ;;  %v1286_v29 = vadd.f32 %v1285_v21, %v1224_v63  ;;  %v1392_v14 = vmul.f32 %v1228_v57, %v1228_v57  ;;  %v1393_v5 = vmul.f32 %v1229_v20, %v1229_v20  ;;  %vm4472_vm4 = vcmp.lt.s32.totalorder %v3382_v42, 512 }
 0x155   : > { %4465 = vst [vmem:[#allocation22_spill] sm:$0xff] %v3668_v32  ;;  %1129 = vst [vmem:[%s3628_s9 + $0x28] sm:$0xff] %v2665_v25  ;;  %v1485_v37 = vadd.f32 %v1387_v61, %v1385_v11  ;;  %v1231_v61 = vsel %vm311_vm5, %v796_v19, 0.0 }
 0x156   : > { %1145 = vst [vmem:[%s3628_s9 + $0xa8] sm:$0xff] %v2681_v26  ;;  %v802_v1 = vpop.f32.mrf.mxu0  ;;  %v3678_v4 = vpop.f32.mrf.mxu1  ;;  %v1386_v26 = vmul.f32 %v1222_v0, %v1222_v0  ;;  %v1390_v0 = vmul.f32 %v1226_v34, %v1226_v34 }
 0x157   : > { %4466 = vst [vmem:[#allocation23_spill] sm:$0xff] %v3678_v4  ;;  %v2666_v15 = vpack.c.bf16 %v802_v1, %v800_v31  ;;  %v2682_v25 = vpack.c.bf16 %v3678_v4, %v3668_v32  ;;  %v1391_v32 = vmul.f32 %v1227_v59, %v1227_v59 }
 0x158   : > { %v804_v35 = vpop.f32.mrf.mxu0  ;;  %v3688_v62 = vpop.f32.mrf.mxu1 }
 0x159   : > { %1130 = vst [vmem:[%s3628_s9 + $0x30] sm:$0xff] %v2666_v15  ;;  %1146 = vst [vmem:[%s3628_s9 + $0xb0] sm:$0xff] %v2682_v25  ;;  %v1448_v15 = vadd.f32 %v1386_v26, %v1384_v17  ;;  %v1322_v25 = vadd.f32 %v1223_v8, %v1221_v3  ;;  %v1486_v26 = vadd.f32 %v1485_v37, %v1389_v23 }
 0x15a   : > { %v806_v58 = vpop.f32.mrf.mxu0  ;;  %v3696_v36 = vpop.f32.mrf.mxu1  ;;  %v1395_v23 = vmul.f32 %v1231_v61, %v1231_v61 }
 0x15b   : > { %4467 = vst [vmem:[#allocation24_spill] sm:$0xff] %v3696_v36  ;;  %v2667_v4 = vpack.c.bf16 %v806_v58, %v804_v35  ;;  %v2683_v27 = vpack.c.bf16 %v3696_v36, %v3688_v62  ;;  %v1449_v55 = vadd.f32 %v1448_v15, %v1388_v60  ;;  %v1323_v33 = vadd.f32 %v1322_v25, %v1225_v9 }
 0x15c   : > { %v810_v7 = vpop.f32.mrf.mxu0  ;;  %v3702_v56 = vpop.f32.mrf.mxu1  ;;  %v1230_v36 = vsel %vm311_vm5, %v794_v13, 0.0  ;;  %v1487_v11 = vadd.f32 %v1486_v26, %v1391_v32  ;;  %v1233_v15 = vsel %vm4469_vm1, %v802_v1, 0.0  ;;  %v1235_v40 = vsel %vm4471_vm3, %v806_v58, 0.0  ;;  %vm4473_vm5 = vmmov %vm4472_vm4 }
 0x15d   : > { %1131 = vst [vmem:[%s3628_s9 + $0x38] sm:$0xff] %v2667_v4  ;;  %1147 = vst [vmem:[%s3628_s9 + $0xb8] sm:$0xff] %v2683_v27  ;;  %v1287_v4 = vadd.f32 %v1286_v29, %v1226_v34  ;;  %v1450_v60 = vadd.f32 %v1449_v55, %v1390_v0  ;;  %v1324_v13 = vadd.f32 %v1323_v33, %v1227_v59  ;;  %v1232_v27 = vsel %vm4468_vm0, %v800_v31, 0.0 }
 0x15e   : > { %v812_v3 = vpop.f32.mrf.mxu0  ;;  %v3710_v8 = vpop.f32.mrf.mxu1  ;;  %v1394_v21 = vmul.f32 %v1230_v36, %v1230_v36  ;;  %v1234_v59 = vsel %vm4470_vm2, %v804_v35, 0.0  ;;  %v1488_v0 = vadd.f32 %v1487_v11, %v1393_v5  ;;  %v1397_v26 = vmul.f32 %v1233_v15, %v1233_v15  ;;  %vm4476_vm1 = vmmov %vm4474_vm6 }
 0x15f   : > { %v2668_v63 = vpack.c.bf16 %v812_v3, %v810_v7  ;;  %v2684_v38 = vpack.c.bf16 %v3710_v8, %v3702_v56  ;;  %v1288_v39 = vadd.f32 %v1287_v4, %v1228_v57  ;;  %v1451_v19 = vadd.f32 %v1450_v60, %v1392_v14 }
 0x160   : > { %v814_v9 = vpop.f32.mrf.mxu0  ;;  %v3716_v17 = vpop.f32.mrf.mxu1  ;;  %v1325_v25 = vadd.f32 %v1324_v13, %v1229_v20  ;;  %v1396_v14 = vmul.f32 %v1232_v27, %v1232_v27  ;;  %v1236_v20 = vsel %vm4472_vm4, %v810_v7, 0.0  ;;  %v1489_v35 = vadd.f32 %v1488_v0, %v1395_v23 }
 0x161   : > { %1132 = vst [vmem:[%s3628_s9 + $0x40] sm:$0xff] %v2668_v63  ;;  %1148 = vst [vmem:[%s3628_s9 + $0xc0] sm:$0xff] %v2684_v38  ;;  %v1289_v57 = vadd.f32 %v1288_v39, %v1230_v36  ;;  %v1452_v29 = vadd.f32 %v1451_v19, %v1394_v21  ;;  %v1398_v38 = vmul.f32 %v1234_v59, %v1234_v59  ;;  %v1237_v36 = vsel %vm4473_vm5, %v812_v3, 0.0 }
 0x162   : > { %v816_v34 = vpop.f32.mrf.mxu0  ;;  %v3724_v55 = vpop.f32.mrf.mxu1  ;;  %v1326_v33 = vadd.f32 %v1325_v25, %v1231_v61  ;;  %v1399_v58 = vmul.f32 %v1235_v40, %v1235_v40  ;;  %v1238_v61 = vsel %vm4474_vm6, %v814_v9, 0.0  ;;  %vm4475_vm0 = vcmp.lt.s32.totalorder %v3406_v50, 512 }
 0x163   : > { %v2669_v32 = vpack.c.bf16 %v816_v34, %v814_v9  ;;  %v2685_v31 = vpack.c.bf16 %v3724_v55, %v3716_v17  ;;  %v1290_v63 = vadd.f32 %v1289_v57, %v1232_v27  ;;  %v1453_v5 = vadd.f32 %v1452_v29, %v1396_v14 }
 0x164   : > { %v820_v1 = vpop.f32.mrf.mxu0  ;;  %v3732_v37 = vpop.f32.mrf.mxu1  ;;  %v1327_v13 = vadd.f32 %v1326_v33, %v1233_v15  ;;  %v3749_v42 = vsel %vm4475_vm0, %v3619_v10, 0.0  ;;  %v1400_v3 = vmul.f32 %v1236_v20, %v1236_v20  ;;  %v1490_v27 = vadd.f32 %v1489_v35, %v1397_v26 }
 0x165   : > { %1133 = vst [vmem:[%s3628_s9 + $0x48] sm:$0xff] %v2669_v32  ;;  %1149 = vst [vmem:[%s3628_s9 + $0xc8] sm:$0xff] %v2685_v31  ;;  %v1291_v39 = vadd.f32 %v1290_v63, %v1234_v59  ;;  %v1401_v19 = vmul.f32 %v1237_v36, %v1237_v36  ;;  %v1239_v9 = vsel %vm4476_vm1, %v816_v34, 0.0  ;;  %v1454_v23 = vadd.f32 %v1453_v5, %v1398_v38 }
 0x166   : > { %v822_v4 = vpop.f32.mrf.mxu0  ;;  %v3740_v41 = vpop.f32.mrf.mxu1  ;;  %v1328_v25 = vadd.f32 %v1327_v13, %v1235_v40  ;;  %v1402_v15 = vmul.f32 %v1238_v61, %v1238_v61  ;;  %vm4477_vm2 = vcmp.lt.s32.totalorder %v3388_v44, 512  ;;  %v1491_v0 = vadd.f32 %v1490_v27, %v1399_v58 }
 0x167   : > { %v2670_v60 = vpack.c.bf16 %v822_v4, %v820_v1  ;;  %v2686_v7 = vpack.c.bf16 %v3740_v41, %v3732_v37  ;;  %v1240_v32 = vsel %vm4477_vm2, %v820_v1, 0.0  ;;  %vm4478_vm3 = vmmov %vm4477_vm2  ;;  %v3767_v34 = vmul.f32 %v3749_v42, %v3749_v42 }
 0x168   : > { %v824_v11 = vpop.f32.mrf.mxu0  ;;  %v3751_v21 = vpop.f32.mrf.mxu1  ;;  %v1241_v59 = vsel %vm4478_vm3, %v822_v4, 0.0  ;;  %v1292_v14 = vadd.f32 %v1291_v39, %v1236_v20  ;;  %v1455_v40 = vadd.f32 %v1454_v23, %v1400_v3  ;;  %v1403_v1 = vmul.f32 %v1239_v9, %v1239_v9 }
 0x169   : > { %1134 = vst [vmem:[%s3628_s9 + $0x50] sm:$0xff] %v2670_v60  ;;  %1150 = vst [vmem:[%s3628_s9 + $0xd0] sm:$0xff] %v2686_v7  ;;  %v1329_v26 = vadd.f32 %v1328_v25, %v1237_v36  ;;  %v1492_v35 = vadd.f32 %v1491_v0, %v1401_v19  ;;  %v1404_v63 = vmul.f32 %v1240_v32, %v1240_v32  ;;  %vm4479_vm4 = vcmp.lt.s32.totalorder %v3391_v45, 512 }
 0x16a   : > { %v826_v10 = vpop.f32.mrf.mxu0  ;;  %v3759_v31 = vpop.f32.mrf.mxu1  ;;  %v1242_v44 = vsel %vm4479_vm4, %v824_v11, 0.0  ;;  %v1293_v38 = vadd.f32 %v1292_v14, %v1238_v61  ;;  %v1456_v4 = vadd.f32 %v1455_v40, %v1402_v15  ;;  %v1405_v58 = vmul.f32 %v1241_v59, %v1241_v59  ;;  %vm4480_vm5 = vmmov %vm4479_vm4 }
 0x16b   : > { %v2671_v57 = vpack.c.bf16 %v826_v10, %v824_v11  ;;  %v2687_v43 = vpack.c.bf16 %v3759_v31, %v3751_v21  ;;  %v1243_v60 = vsel %vm4480_vm5, %v826_v10, 0.0  ;;  %v1330_v5 = vadd.f32 %v1329_v26, %v1239_v9 }
 0x16c   : > { %v830_v29 = vpop.f32.mrf.mxu0  ;;  %v3769_v33 = vpop.f32.mrf.mxu1  ;;  %vm4481_vm6 = vcmp.lt.s32.totalorder %v3394_v46, 512  ;;  %v1493_v11 = vadd.f32 %v1492_v35, %v1403_v1  ;;  %v1294_v61 = vadd.f32 %v1293_v38, %v1240_v32  ;;  %v1406_v27 = vmul.f32 %v1242_v44, %v1242_v44 }
 0x16d   : > { %1135 = vst [vmem:[%s3628_s9 + $0x58] sm:$0xff] %v2671_v57  ;;  %1151 = vst [vmem:[%s3628_s9 + $0xd8] sm:$0xff] %v2687_v43  ;;  %v1244_v36 = vsel %vm4481_vm6, %v830_v29, 0.0  ;;  %vm4483_vm1 = vcmp.lt.s32.totalorder %v3406_v50, 512  ;;  %v1457_v23 = vadd.f32 %v1456_v4, %v1404_v63  ;;  %v1407_v25 = vmul.f32 %v1243_v60, %v1243_v60 }
 0x16e   : > { %v832_v20 = vpop.f32.mrf.mxu0  ;;  %v3777_v7 = vpop.f32.mrf.mxu1  ;;  %vm4482_vm0 = vmmov %vm4481_vm6  ;;  %v3790_v9 = vsel %vm4483_vm1, %v3621_v12, 0.0  ;;  %vm4484_vm2 = vcmp.lt.s32.totalorder %v3397_v47, 512  ;;  %v1331_v32 = vadd.f32 %v1330_v5, %v1241_v59  ;;  %v1494_v10 = vadd.f32 %v1493_v11, %v1405_v58 }
 0x16f   : > { %v2672_v13 = vpack.c.bf16 %v832_v20, %v830_v29  ;;  %v2688_v3 = vpack.c.bf16 %v3777_v7, %v3769_v33  ;;  %v1245_v45 = vsel %vm4482_vm0, %v832_v20, 0.0  ;;  %v1295_v0 = vadd.f32 %v1294_v61, %v1242_v44  ;;  %vm4485_vm3 = vmmov %vm4484_vm2 }
 0x170   : > { %v834_v39 = vpop.f32.mrf.mxu0  ;;  %v3785_v19 = vpop.f32.mrf.mxu1  ;;  %v1408_v46 = vmul.f32 %v1244_v36, %v1244_v36  ;;  %v1409_v14 = vmul.f32 %v1245_v45, %v1245_v45  ;;  %v1458_v1 = vadd.f32 %v1457_v23, %v1406_v27  ;;  %v1332_v29 = vadd.f32 %v1331_v32, %v1243_v60 }
 0x171   : > { %1136 = vst [vmem:[%s3628_s9 + $0x60] sm:$0xff] %v2672_v13  ;;  %v1246_v15 = vsel %vm4484_vm2, %v834_v39, 0.0  ;;  %1152 = vst [vmem:[%s3628_s9 + $0xe0] sm:$0xff] %v2688_v3  ;;  %v1296_v26 = vadd.f32 %v1295_v0, %v1244_v36  ;;  %vm4486_vm4 = vcmp.lt.s32.totalorder %v3409_v51, 512  ;;  %v1495_v38 = vadd.f32 %v1494_v10, %v1407_v25 }
 0x172   : > { %v836_v57 = vpop.f32.mrf.mxu0  ;;  %v3796_v43 = vpop.f32.mrf.mxu1  ;;  %v1410_v59 = vmul.f32 %v1246_v15, %v1246_v15  ;;  %v1254_v44 = vsel %vm4486_vm4, %v3625_v16, 0.0  ;;  %vm4487_vm5 = vcmp.lt.s32.totalorder %v3400_v48, 512  ;;  %v1459_v58 = vadd.f32 %v1458_v1, %v1408_v46  ;;  %vm4489_vm0 = vmmov %vm4486_vm4 }
 0x173   : > { %v2673_v50 = vpack.c.bf16 %v836_v57, %v834_v39  ;;  %v1247_v12 = vsel %vm4485_vm3, %v836_v57, 0.0  ;;  %v2689_v40 = vpack.c.bf16 %v3796_v43, %v3785_v19  ;;  %v1333_v20 = vadd.f32 %v1332_v29, %v1245_v45  ;;  %vm4488_vm6 = vmmov %vm4487_vm5 }
 0x174   : > { %v840_v35 = vpop.f32.mrf.mxu0  ;;  %v3802_v63 = vpop.f32.mrf.mxu1  ;;  %v1411_v4 = vmul.f32 %v1247_v12, %v1247_v12  ;;  %v1297_v5 = vadd.f32 %v1296_v26, %v1246_v15  ;;  %v1496_v3 = vadd.f32 %v1495_v38, %v1409_v14  ;;  %v1460_v27 = vadd.f32 %v1459_v58, %v1410_v59 }
 0x175   : > { %1137 = vst [vmem:[%s3628_s9 + $0x68] sm:$0xff] %v2673_v50  ;;  %v1248_v47 = vsel %vm4487_vm5, %v840_v35, 0.0  ;;  %1153 = vst [vmem:[%s3628_s9 + $0xe8] sm:$0xff] %v2689_v40  ;;  %v1334_v39 = vadd.f32 %v1333_v20, %v1247_v12  ;;  %v1255_v32 = vsel %vm4489_vm0, %v3632_v18, 0.0  ;;  %vm4490_vm1 = vcmp.lt.s32.totalorder %v3412_v52, 512 }
 0x176   : > { %v1412_v60 = vmul.f32 %v1248_v47, %v1248_v47  ;;  %v842_v36 = vpop.f32.mrf.mxu0  ;;  %v3811_v13 = vpop.f32.mrf.mxu1  ;;  %v1298_v23 = vadd.f32 %v1297_v5, %v1248_v47  ;;  %v1256_v10 = vsel %vm4490_vm1, %v3636_v22, 0.0  ;;  %v1497_v48 = vadd.f32 %v1496_v3, %v1411_v4  ;;  %vm4493_vm4 = vmmov %vm4490_vm1 }
 0x177   : > { %v2674_v11 = vpack.c.bf16 %v842_v36, %v840_v35  ;;  %v1249_v16 = vsel %vm4488_vm6, %v842_v36, 0.0  ;;  %v2690_v61 = vpack.c.bf16 %v3811_v13, %v3802_v63  ;;  %vm4491_vm2 = vcmp.lt.s32.totalorder %v3403_v49, 512 }
 0x178   : > { %v1413_v25 = vmul.f32 %v1249_v16, %v1249_v16  ;;  %v844_v45 = vpop.f32.mrf.mxu0  ;;  %v3817_v15 = vpop.f32.mrf.mxu1  ;;  %v1461_v46 = vadd.f32 %v1460_v27, %v1412_v60  ;;  %v1335_v57 = vadd.f32 %v1334_v39, %v1249_v16  ;;  %vm4492_vm3 = vmmov %vm4491_vm2  ;;  %v1417_v38 = vmul.f32 %v3790_v9, %v3790_v9  ;;  %v4499_v27 = vld [vmem:[#allocation9_spill] sm:$0xff] }
 0x179   : > { %1138 = vst [vmem:[%s3628_s9 + $0x70] sm:$0xff] %v2674_v11  ;;  %v1250_v0 = vsel %vm4491_vm2, %v844_v45, 0.0  ;;  %1154 = vst [vmem:[%s3628_s9 + $0xf0] sm:$0xff] %v2690_v61  ;;  %v1418_v4 = vmul.f32 %v1254_v44, %v1254_v44  ;;  %v1257_v47 = vsel %vm4493_vm4, %v3640_v24, 0.0  ;;  %vm4494_vm5 = vcmp.lt.s32.totalorder %v3415_v53, 512 }
 0x17a   : > { %v1299_v14 = vadd.f32 %v1298_v23, %v1250_v0  ;;  %v1414_v50 = vmul.f32 %v1250_v0, %v1250_v0  ;;  %v846_v12 = vpop.f32.mrf.mxu0  ;;  %v3829_v40 = vpop.f32.mrf.mxu1  ;;  %v1498_v51 = vadd.f32 %v1497_v48, %v1413_v25  ;;  %v1258_v49 = vsel %vm4494_vm5, %v3644_v28, 0.0  ;;  %vm4495_vm6 = vmmov %vm4494_vm5  ;;  %v4503_v48 = vld [vmem:[#allocation22_spill] sm:$0xff] }
 0x17b   : > { %v2675_v18 = vpack.c.bf16 %v846_v12, %v844_v45  ;;  %v1251_v22 = vsel %vm4492_vm3, %v846_v12, 0.0  ;;  %v2691_v1 = vpack.c.bf16 %v3829_v40, %v3817_v15  ;;  %v1419_v60 = vmul.f32 %v1255_v32, %v1255_v32 }
 0x17c   : > { %v1300_v29 = vadd.f32 %v1299_v14, %v3749_v42  ;;  %v1462_v26 = vadd.f32 %v1461_v46, %v1414_v50  ;;  %v1336_v59 = vadd.f32 %v1335_v57, %v1251_v22  ;;  %v1415_v35 = vmul.f32 %v1251_v22, %v1251_v22 }
 0x17d   : > { %1139 = vst [vmem:[%s3628_s9 + $0x78] sm:$0xff] %v2675_v18  ;;  %1155 = vst [vmem:[%s3628_s9 + $0xf8] sm:$0xff] %v2691_v1  ;;  %v1420_v36 = vmul.f32 %v1256_v10, %v1256_v10  ;;  %v1259_v3 = vsel %vm4495_vm6, %v3648_v30, 0.0  ;;  %vm4496_vm0 = vcmp.lt.s32.totalorder %v3418_v54, 512  ;;  %v1422_v61 = vmul.f32 %v1258_v49, %v1258_v49 }
 0x17e   : > { %v1301_v58 = vadd.f32 %v1300_v29, %v1254_v44  ;;  %v1463_v42 = vadd.f32 %v1462_v26, %v3767_v34  ;;  %v1337_v20 = vadd.f32 %v1336_v59, %v3790_v9  ;;  %v1499_v5 = vadd.f32 %v1498_v51, %v1415_v35  ;;  %vm4497_vm1 = vmmov %vm4496_vm0  ;;  %v4498_v9 = vld [vmem:[#allocation20_spill] sm:$0xff]  ;;  %v4505_v51 = vld [vmem:[#allocation23_spill] sm:$0xff] }
 0x17f   : > { %v1260_v52 = vsel %vm4496_vm0, %v3652_v2, 0.0  ;;  %v1421_v44 = vmul.f32 %v1257_v47, %v1257_v47  ;;  %v1261_v34 = vsel %vm4497_vm1, %v3656_v6, 0.0  ;;  %vm4500_vm2 = vcmp.lt.s32.totalorder %v4499_v27, 512  ;;  %v4510_v27 = vld [vmem:[#allocation14_spill] sm:$0xff] }
 0x180   : > { %v1302_v24 = vadd.f32 %v1301_v58, %v1256_v10  ;;  %v1464_v28 = vadd.f32 %v1463_v42, %v1418_v4  ;;  %v1338_v11 = vadd.f32 %v1337_v20, %v1255_v32  ;;  %v1500_v16 = vadd.f32 %v1499_v5, %v1417_v38  ;;  %v4501_v10 = vld [vmem:[#allocation21_spill] sm:$0xff]  ;;  %vm4502_vm3 = vmmov %vm4500_vm2 }
 0x181   : > { %v1262_v39 = vsel %vm4500_vm2, %v4498_v9, 0.0  ;;  %v1423_v45 = vmul.f32 %v1259_v3, %v1259_v3  ;;  %v1424_v2 = vmul.f32 %v1260_v52, %v1260_v52  ;;  %v1263_v32 = vsel %vm4502_vm3, %v4501_v10, 0.0 }
 0x182   : > { %v1303_v53 = vadd.f32 %v1302_v24, %v1258_v49  ;;  %v1465_v30 = vadd.f32 %v1464_v28, %v1420_v36  ;;  %v1339_v23 = vadd.f32 %v1338_v11, %v1257_v47  ;;  %v1501_v25 = vadd.f32 %v1500_v16, %v1419_v60  ;;  %v4507_v47 = vld [vmem:[#allocation24_spill] sm:$0xff] }
 0x183   : > { %v1264_v46 = vsel %vm328_vm12, %v4503_v48, 0.0  ;;  %v1425_v50 = vmul.f32 %v1261_v34, %v1261_v34  ;;  %v1426_v12 = vmul.f32 %v1262_v39, %v1262_v39  ;;  %v1265_v18 = vsel %vm328_vm12, %v4505_v51, 0.0 }
 0x184   : > { %v1466_v54 = vadd.f32 %v1465_v30, %v1422_v61  ;;  %v1340_v6 = vadd.f32 %v1339_v23, %v1259_v3  ;;  %v1502_v57 = vadd.f32 %v1501_v25, %v1421_v44  ;;  %v1304_v14 = vadd.f32 %v1303_v53, %v1260_v52 }
 0x185   : > { %v1266_v1 = vsel %vm329_vm13, %v3688_v62, 0.0  ;;  %v1427_v38 = vmul.f32 %v1263_v32, %v1263_v32  ;;  %v1428_v4 = vmul.f32 %v1264_v46, %v1264_v46  ;;  %v1267_v49 = vsel %vm329_vm13, %v4507_v47, 0.0 }
 0x186   : > { %v1341_v29 = vadd.f32 %v1340_v6, %v1261_v34  ;;  %v1503_v26 = vadd.f32 %v1502_v57, %v1423_v45  ;;  %v1305_v59 = vadd.f32 %v1304_v14, %v1262_v39  ;;  %v1467_v35 = vadd.f32 %v1466_v54, %v1424_v2 }
 0x187   : > { %v1268_v42 = vsel %vm330_vm14, %v3702_v56, 0.0  ;;  %v1429_v3 = vmul.f32 %v1265_v18, %v1265_v18  ;;  %v1430_v62 = vmul.f32 %v1266_v1, %v1266_v1  ;;  %v1269_v52 = vsel %vm330_vm14, %v3710_v8, 0.0 }
 0x188   : > { %v1504_v20 = vadd.f32 %v1503_v26, %v1425_v50  ;;  %v1306_v5 = vadd.f32 %v1305_v59, %v1264_v46  ;;  %v1468_v60 = vadd.f32 %v1467_v35, %v1426_v12  ;;  %v1342_v36 = vadd.f32 %v1341_v29, %v1263_v32 }
 0x189   : > { %v1270_v28 = vsel %vm331_vm15, %v3716_v17, 0.0  ;;  %v1431_v34 = vmul.f32 %v1267_v49, %v1267_v49  ;;  %v1432_v56 = vmul.f32 %v1268_v42, %v1268_v42  ;;  %v1271_v9 = vsel %vm331_vm15, %v3724_v55, 0.0 }
 0x18a   : > { %v1307_v11 = vadd.f32 %v1306_v5, %v1266_v1  ;;  %v1469_v16 = vadd.f32 %v1468_v60, %v1428_v4  ;;  %v1343_v44 = vadd.f32 %v1342_v36, %v1265_v18  ;;  %v1505_v61 = vadd.f32 %v1504_v20, %v1427_v38 }
 0x18b   : > { %vm4511_vm12 = vcmp.lt.s32.totalorder %v4510_v27, 512  ;;  %v1433_v25 = vmul.f32 %v1269_v52, %v1269_v52  ;;  %v1434_v17 = vmul.f32 %v1270_v28, %v1270_v28  ;;  %v1274_v10 = vsel %vm333_vm7, %v3751_v21, 0.0 }
 0x18c   : > { %v1272_v39 = vsel %vm4511_vm12, %v3732_v37, 0.0  ;;  %v1308_v53 = vadd.f32 %v1307_v11, %v1268_v42  ;;  %v1470_v8 = vadd.f32 %v1469_v16, %v1430_v62  ;;  %v1344_v30 = vadd.f32 %v1343_v44, %v1267_v49  ;;  %vm4512_vm13 = vmmov %vm4511_vm12 }
 0x18d   : > { %v1506_v23 = vadd.f32 %v1505_v61, %v1429_v3  ;;  %v1273_v45 = vsel %vm4512_vm13, %v3740_v41, 0.0  ;;  %v1435_v46 = vmul.f32 %v1271_v9, %v1271_v9  ;;  %v1436_v37 = vmul.f32 %v1272_v39, %v1272_v39 }
 0x18e   : > { %v1309_v32 = vadd.f32 %v1308_v53, %v1270_v28  ;;  %v1471_v55 = vadd.f32 %v1470_v8, %v1432_v56  ;;  %v1345_v48 = vadd.f32 %v1344_v30, %v1269_v52  ;;  %v1275_v54 = vsel %vm333_vm7, %v3759_v31, 0.0 }
 0x18f   : > { %v1507_v0 = vadd.f32 %v1506_v23, %v1431_v34  ;;  %v1276_v57 = vsel %vm334_vm8, %v3769_v33, 0.0  ;;  %v1437_v51 = vmul.f32 %v1273_v45, %v1273_v45  ;;  %v1438_v21 = vmul.f32 %v1274_v10, %v1274_v10 }
 0x190   : > { %v1472_v14 = vadd.f32 %v1471_v55, %v1434_v17  ;;  %v1346_v41 = vadd.f32 %v1345_v48, %v1271_v9  ;;  %v1310_v12 = vadd.f32 %v1309_v32, %v1272_v39  ;;  %v1277_v18 = vsel %vm334_vm8, %v3777_v7, 0.0 }
 0x191   : > { %v1508_v50 = vadd.f32 %v1507_v0, %v1433_v25  ;;  %v1278_v1 = vsel %vm335_vm9, %v3785_v19, 0.0  ;;  %v1439_v35 = vmul.f32 %v1275_v54, %v1275_v54  ;;  %v1440_v33 = vmul.f32 %v1276_v57, %v1276_v57 }
 0x192   : > { %v1473_v31 = vadd.f32 %v1472_v14, %v1436_v37  ;;  %v1347_v26 = vadd.f32 %v1346_v41, %v1273_v45  ;;  %v1311_v59 = vadd.f32 %v1310_v12, %v1274_v10  ;;  %v1279_v38 = vsel %vm335_vm9, %v3796_v43, 0.0 }
 0x193   : > { %v1509_v29 = vadd.f32 %v1508_v50, %v1435_v46  ;;  %v1280_v47 = vsel %vm336_vm10, %v3802_v63, 0.0  ;;  %v1441_v20 = vmul.f32 %v1277_v18, %v1277_v18  ;;  %v1442_v19 = vmul.f32 %v1278_v1, %v1278_v1 }
 0x194   : > { %v1474_v7 = vadd.f32 %v1473_v31, %v1438_v21  ;;  %v1348_v58 = vadd.f32 %v1347_v26, %v1275_v54  ;;  %v1312_v42 = vadd.f32 %v1311_v59, %v1276_v57  ;;  %v1281_v5 = vsel %vm336_vm10, %v3811_v13, 0.0 }
 0x195   : > { %v1510_v49 = vadd.f32 %v1509_v29, %v1437_v51  ;;  %v1282_v36 = vsel %vm337_vm11, %v3817_v15, 0.0  ;;  %v1443_v24 = vmul.f32 %v1279_v38, %v1279_v38  ;;  %v1444_v63 = vmul.f32 %v1280_v47, %v1280_v47  ;;  %v4518_v29 = vld [vmem:[#allocation8_spill] sm:$0xff] }
 0x196   : > { %v1475_v43 = vadd.f32 %v1474_v7, %v1440_v33  ;;  %v1349_v62 = vadd.f32 %v1348_v58, %v1277_v18  ;;  %v1313_v52 = vadd.f32 %v1312_v42, %v1278_v1  ;;  %v1283_v28 = vsel %vm337_vm11, %v3829_v40, 0.0  ;;  %v1383_v42 = vld [vmem:[#allocation3] sm:$0x3] }
 0x197   : > { %v1511_v3 = vadd.f32 %v1510_v49, %v1439_v35  ;;  %v1445_v34 = vmul.f32 %v1281_v5, %v1281_v5  ;;  %v1446_v13 = vmul.f32 %v1282_v36, %v1282_v36  ;;  %v1447_v39 = vmul.f32 %v1283_v28, %v1283_v28 }
 0x198   : > { %v1476_v16 = vadd.f32 %v1475_v43, %v1442_v19  ;;  %v1350_v44 = vadd.f32 %v1349_v62, %v1279_v38  ;;  %v1314_v61 = vadd.f32 %v1313_v52, %v1280_v47  ;;  %v3203_v40 = vmov 1966171168   ;;  %v1284_v47 = vld [vmem:[#allocation2] sm:$0x3] }
 0x199   : > { %v1512_v11 = vadd.f32 %v1511_v3, %v1441_v20  ;;  %v1363_v10 = vunpack.c.l.s4 %v3203_v40  ;;  %v4519_v58 = vlaneseq }
 0x19a   : > { %v1477_v9 = vadd.f32 %v1476_v16, %v1444_v63  ;;  %v1351_v27 = vadd.f32 %v1350_v44, %v1281_v5  ;;  %v1315_v15 = vadd.f32 %v1314_v61, %v1282_v36 }
 0x19b   : > { %v1513_v56 = vadd.f32 %v1512_v11, %v1443_v24  ;;  %v1364_v57 = vunpack.c.0.s8 %v1363_v10  ;;  %vm1380_vm7 = vcmp.lt.s32.totalorder %v4519_v58, 256 }
 0x19c   : > { %v1316_v8 = vrot.slane %v1315_v15, 4  ;;  %v1478_v30 = vadd.f32 %v1477_v9, %v1446_v13  ;;  %v1352_v23 = vadd.f32 %v1351_v27, %v1283_v28 }
 0x19d   : > { %v1514_v53 = vadd.f32 %v1513_v56, %v1445_v34  ;;  %v1367_v31 = vsub.s32 %v1364_v57, %v4518_v29 }
 0x19e   : > { %v1317_v25 = vadd.f32 %v1316_v8, %v1315_v15  ;;  %v1479_v17 = vrot.slane %v1478_v30, 4  ;;  %v1353_v45 = vrot.slane %v1352_v23, 4 }
 0x19f   : > { %v1515_v2 = vadd.f32 %v1514_v53, %v1447_v39 }
 0x1a0   : > { %v1318_v32 = vrot.slane %v1317_v25, 2  ;;  %v1480_v55 = vadd.f32 %v1479_v17, %v1478_v30  ;;  %v1354_v48 = vadd.f32 %v1353_v45, %v1352_v23 }
 0x1a1   : > { %v1516_v0 = vrot.slane %v1515_v2, 4 }
 0x1a2   : > { %v1319_v46 = vadd.f32 %v1318_v32, %v1317_v25  ;;  %v1481_v37 = vrot.slane %v1480_v55, 2  ;;  %v1355_v54 = vrot.slane %v1354_v48, 2 }
 0x1a3   : > { %v1517_v6 = vadd.f32 %v1516_v0, %v1515_v2 }
 0x1a4   : > { %v1320_v14 = vrot.slane %v1319_v46, 1  ;;  %v1482_v41 = vadd.f32 %v1481_v37, %v1480_v55  ;;  %v1356_v50 = vadd.f32 %v1355_v54, %v1354_v48 }
 0x1a5   : > { %v1518_v12 = vrot.slane %v1517_v6, 2 }
 0x1a6   : > { %v1483_v51 = vrot.slane %v1482_v41, 1  ;;  %v1357_v21 = vrot.slane %v1356_v50, 1  ;;  %v1321_v22 = vadd.f32 %v1320_v14, %v1319_v46 }
 0x1a7   : > { %v1519_v18 = vadd.f32 %v1518_v12, %v1517_v6 }
 0x1a8   : > { %v1358_v1 = vadd.f32 %v1357_v21, %v1356_v50  ;;  %v1484_v59 = vadd.f32 %v1483_v51, %v1482_v41 }
 0x1a9   : > { %v1520_v26 = vrot.slane %v1519_v18, 1 }
 0x1aa   : > { %v1361_v35 = vcombine.low %v1321_v22, %v1358_v1 }
 0x1ab   : > { %v1521_v33 = vadd.f32 %v1520_v26, %v1519_v18 }
 0x1ac   : > { %v1368_v38 = vrot.slane %v1361_v35, %v1367_v31 }
 0x1ad   : > { %v1524_v4 = vcombine.low %v1484_v59, %v1521_v33 }
 0x1ae   : > { %v1375_v49 = vrot.slane %v1368_v38, %v1367_v31 }
 0x1af   : > { %v1531_v7 = vrot.slane %v1524_v4, %v1367_v31 }
 0x1b0   : > { %v1377_v20 = vadd.f32 %v1375_v49, %v1284_v47 }
 0x1b1   : > { %v1538_v19 = vrot.slane %v1531_v7, %v1367_v31 }
 0x1b2   : > { %1382 = vst.msk [vmem:[#allocation2] sm:$0x3] %vm1380_vm7, %v1377_v20 }
 0x1b3   : > { %v1540_v5 = vadd.f32 %v1538_v19, %v1383_v42 }
 0x1b5   : > { %1541 = vst.msk [vmem:[#allocation3] sm:$0x3] %vm1380_vm7, %v1540_v5 }
 0x1b6 PF: > { %p2633_p1 = scmp.ne.s32.totalorder %s3188_s19, 1 }
 0x1b7   : > { %p2634_p2 = scmp.ne.s32.totalorder (!%p2633_p1), %s3184_s18, 0 }
 0x1b8   : > { %1545 = sbr.rel (%p2633_p1) target bundleno = 935 (0x3a7), region = 48 }
 0x1bd   : > { %1549 = sbr.rel (%p2634_p2) target bundleno = 482 (0x1e2), region = 52 }
 0x1c2   : > { %v1550_v60 = vld [vmem:[#allocation2] sm:$0x3]  ;;  %v1552_v36 = vld [vmem:[#allocation3] sm:$0x3]  ;;  %v4520_v16 = vlaneseq }
 0x1c3   : > { %v1551_v3 = vmul.f32 0.001953125, %v1550_v60  ;;  %v1553_v43 = vmul.f32 0.001953125, %v1552_v36  ;;  %v1557_v28 = vld [vmem:[%s4416_s2] ss:$2 sm:$0x3] }
 0x1c4   : > { %vm1567_vm8 = vcmp.lt.s32.totalorder %v4520_v16, 256  ;;  %v2635_v61 = vld [vmem:[%s4416_s2 + $0x1] ss:$2 sm:$0x3] }
 0x1c5   : > { %v1554_v62 = vmul.f32 %v1551_v3, %v1551_v3 }
 0x1c7   : > { %v1555_v52 = vsub.f32 %v1553_v43, %v1554_v62 }
 0x1c9   : > { %v1556_v24 = vmax.f32 %v1555_v52, 0.0 }
 0x1cb   : > { %v1558_v63 = vadd.f32 1e-05, %v1556_v24 }
 0x1cd   : > { %3026 = vrsqrt.f32 %v1558_v63 }
 0x1da   : > { %v3027_v11 = vpop.eup %3026 }
 0x1db   : > { %v1560_v44 = vmul.f32 %v3027_v11, %v1557_v28 }
 0x1dd   : > { %v1563_v34 = vmul.f32 %v1560_v44, %v1551_v3  ;;  %1569 = vst.msk [vmem:[#allocation2] sm:$0x3] %vm1567_vm8, %v1560_v44 }
 0x1df   : > { %v1564_v13 = vsub.f32 %v2635_v61, %v1563_v34 }
 0x1e1   : > { %1570 = vst.msk [vmem:[#allocation3] sm:$0x3] %vm1567_vm8, %v1564_v13 }
 0x1e2 PF: > { %v3028_v56 = vld [vmem:[%s4417_s3 + $0x78] sm:$0xff]   ;;  %v3030_v27 = vld [vmem:[%s4417_s3 + $0x70] sm:$0xff]   ;;  %v3032_v39 = vld [vmem:[%s4417_s3 + $0x68] sm:$0xff]   ;;  %s3970_s24 = scalar_lea.vmem [#allocation4], %s3311_s12 }
 0x1e3   : > { %v3029_v9 = vld [vmem:[%s4417_s3 + $0x38] sm:$0xff]   ;;  %2695 = vmatprep.subr.bf16.mxu0 %v3028_v56  ;;  %2839 = vmatprep.subr.bf16.mxu1 %v3028_v56  ;;  %v3031_v15 = vld [vmem:[%s4417_s3 + $0x30] sm:$0xff]   ;;  %v3033_v53 = vld [vmem:[%s4417_s3 + $0x28] sm:$0xff]  }
 0x1e4   : > { %2696 = vmatpush3.bf16.msra.mxu0 %v3029_v9  ;;  %2847 = vmatpush3.bf16.msra.mxu1 %v3029_v9  ;;  %v3034_v8 = vld [vmem:[%s4417_s3 + $0x60] sm:$0xff]   ;;  %v3036_v23 = vld [vmem:[%s4417_s3 + $0x58] sm:$0xff]   ;;  %v3038_v40 = vld [vmem:[%s4417_s3 + $0x50] sm:$0xff]  }
 0x1e5   : > { %2697 = vmatprep.subr.bf16.mxu0 %v3030_v27  ;;  %2840 = vmatprep.subr.bf16.mxu1 %v3030_v27  ;;  %v3035_v30 = vld [vmem:[%s4417_s3 + $0x20] sm:$0xff]   ;;  %v3037_v45 = vld [vmem:[%s4417_s3 + $0x18] sm:$0xff]   ;;  %v1575_v32 = vld [vmem:[%s3970_s24 + $0x8] sm:$0xff] }
 0x1e6   : > { %v4521_v25 = vld [vmem:[#allocation8_spill] sm:$0xff]  ;;  %v1670_v55 = vld [vmem:[#allocation2] sm:$0x3]  ;;  %v1608_v46 = vunpack.c.l.bf16 %v1575_v32  ;;  %v1609_v37 = vunpack.c.h.bf16 %v1575_v32  ;;  %v3985_v51 = vld [vmem:[%s3970_s24 + $0x10] sm:$0xff] }
 0x1e7   : > { %v1674_v17 = vsub.s32 0, %v4521_v25  ;;  %v1678_v2 = vsub.s32 1, %v4521_v25  ;;  %v1574_v10 = vld [vmem:[%s3970_s24] sm:$0xff]  ;;  %v1591_v57 = vld [vmem:[%s3970_s24 + $0x88] sm:$0xff]  ;;  %v3039_v21 = vld [vmem:[%s4417_s3 + $0x10] sm:$0xff]   ;;  %v1611_v38 = vunpack.c.h.bf16 %v3985_v51 }
 0x1e8   : > { %2698 = vmatpush3.bf16.msra.mxu0 %v3031_v15  ;;  %2848 = vmatpush3.bf16.msra.mxu1 %v3031_v15  ;;  %v1606_v48 = vunpack.c.l.bf16 %v1574_v10  ;;  %v1607_v0 = vunpack.c.h.bf16 %v1574_v10  ;;  %v1746_v54 = vld [vmem:[#allocation3] sm:$0x3]  ;;  %v1640_v1 = vunpack.c.l.bf16 %v1591_v57  ;;  %v1641_v29 = vunpack.c.h.bf16 %v1591_v57  ;;  %v3040_v31 = vld [vmem:[%s4417_s3 + $0x48] sm:$0xff]   ;;  %v1577_v33 = vld [vmem:[%s3970_s24 + $0x18] sm:$0xff] }
 0x1e9   : > { %2699 = vmatprep.subr.bf16.mxu0 %v3032_v39  ;;  %2841 = vmatprep.subr.bf16.mxu1 %v3032_v39  ;;  %v1590_v6 = vld [vmem:[%s3970_s24 + $0x80] sm:$0xff]  ;;  %v3976_v14 = vrot.slane %v1670_v55, %v1674_v17  ;;  %v3978_v41 = vrot.slane %v1670_v55, %v1678_v2  ;;  %v3980_v50 = vrot.slane %v1746_v54, %v1674_v17  ;;  %v3041_v5 = vld [vmem:[%s4417_s3 + $0x8] sm:$0xff]   ;;  %v1613_v43 = vunpack.c.h.bf16 %v1577_v33  ;;  %v1592_v11 = vld [vmem:[%s3970_s24 + $0x90] sm:$0xff] }
 0x1ea   : > { %v3982_v12 = vrot.slane %v1746_v54, %v1678_v2  ;;  %v1638_v18 = vunpack.c.l.bf16 %v1590_v6  ;;  %v1639_v22 = vunpack.c.h.bf16 %v1590_v6  ;;  %v3042_v62 = vld [vmem:[%s4417_s3 + $0x40] sm:$0xff]   ;;  %v1593_v13 = vld [vmem:[%s3970_s24 + $0x98] sm:$0xff]  ;;  %v1610_v2 = vunpack.c.l.bf16 %v3985_v51 }
 0x1eb   : > { %v1683_v26 = vmul.f32 %v3978_v41, %v1607_v0  ;;  %v1685_v59 = vmul.f32 %v3978_v41, %v1609_v37  ;;  %v1682_v35 = vmul.f32 %v3976_v14, %v1606_v48  ;;  %v1717_v47 = vmul.f32 %v3978_v41, %v1641_v29  ;;  %v3043_v39 = vld [vmem:[%s4417_s3] sm:$0xff]  }
 0x1ec   : > { %2700 = vmatpush3.bf16.msra.mxu0 %v3033_v53  ;;  %2849 = vmatpush3.bf16.msra.mxu1 %v3033_v53  ;;  %v1715_v4 = vmul.f32 %v3978_v41, %v1639_v22  ;;  %v1684_v49 = vmul.f32 %v3976_v14, %v1608_v46  ;;  %v1714_v7 = vmul.f32 %v3976_v14, %v1638_v18  ;;  %v1612_v32 = vunpack.c.l.bf16 %v1577_v33  ;;  %v1578_v48 = vld [vmem:[%s3970_s24 + $0x20] sm:$0xff]  ;;  %v1579_v18 = vld [vmem:[%s3970_s24 + $0x28] sm:$0xff] }
 0x1ed   : > { %2701 = vmatprep.subr.bf16.mxu0 %v3034_v8  ;;  %2842 = vmatprep.subr.bf16.mxu1 %v3034_v8  ;;  %v1759_v58 = vadd.f32 %v3982_v12, %v1683_v26  ;;  %v1761_v42 = vadd.f32 %v3982_v12, %v1685_v59  ;;  %v1758_v20 = vadd.f32 %v3980_v50, %v1682_v35  ;;  %v1642_v55 = vunpack.c.l.bf16 %v1592_v11  ;;  %v1594_v26 = vld [vmem:[%s3970_s24 + $0xa0] sm:$0xff] }
 0x1ee   : > { %v1716_v19 = vmul.f32 %v3976_v14, %v1640_v1  ;;  %v1791_v60 = vadd.f32 %v3982_v12, %v1715_v4  ;;  %v1793_v36 = vadd.f32 %v3982_v12, %v1717_v47  ;;  %v1760_v3 = vadd.f32 %v3980_v50, %v1684_v49  ;;  %v1595_v4 = vld [vmem:[%s3970_s24 + $0xa8] sm:$0xff] }
 0x1ef   : > { %v1823_v52 = vmax.f32 %v1759_v58, 0.0  ;;  %v1825_v24 = vmax.f32 %v1761_v42, 0.0  ;;  %v1822_v63 = vmax.f32 %v1758_v20, 0.0  ;;  %v1790_v28 = vadd.f32 %v3980_v50, %v1714_v7 }
 0x1f0   : > { %2702 = vmatpush3.bf16.msra.mxu0 %v3035_v30  ;;  %2850 = vmatpush3.bf16.msra.mxu1 %v3035_v30  ;;  %v1855_v16 = vmax.f32 %v1791_v60, 0.0  ;;  %v1857_v44 = vmax.f32 %v1793_v36, 0.0  ;;  %v1824_v61 = vmax.f32 %v1760_v3, 0.0  ;;  %v1792_v34 = vadd.f32 %v3980_v50, %v1716_v19 }
 0x1f1   : > { %2703 = vmatprep.subr.bf16.mxu0 %v3036_v23  ;;  %2843 = vmatprep.subr.bf16.mxu1 %v3036_v23  ;;  %v1887_v56 = vpack.c.bf16 %v1825_v24, %v1823_v52  ;;  %v1854_v9 = vmax.f32 %v1790_v28, 0.0  ;;  %v1687_v27 = vmul.f32 %v3978_v41, %v1611_v38  ;;  %v1689_v15 = vmul.f32 %v3978_v41, %v1613_v43 }
 0x1f2   : > { %v1903_v53 = vpack.c.bf16 %v1857_v44, %v1855_v16  ;;  %v1886_v8 = vpack.c.bf16 %v1824_v61, %v1822_v63  ;;  %v1856_v30 = vmax.f32 %v1792_v34, 0.0  ;;  %v1643_v23 = vunpack.c.h.bf16 %v1592_v11  ;;  %v1580_v61 = vld [vmem:[%s3970_s24 + $0x30] sm:$0xff] }
 0x1f3   : > { %v1763_v25 = vadd.f32 %v3982_v12, %v1687_v27  ;;  %v1765_v17 = vadd.f32 %v3982_v12, %v1689_v15  ;;  %2078 = vmatprep.mubr.bf16.mxu0 %v1887_v56  ;;  %v1686_v54 = vmul.f32 %v3976_v14, %v1610_v2  ;;  %v1688_v57 = vmul.f32 %v3976_v14, %v1612_v32 }
 0x1f4   : > { %2704 = vmatpush3.bf16.msra.mxu0 %v3037_v45  ;;  %2851 = vmatpush3.bf16.msra.mxu1 %v3037_v45  ;;  %v1645_v45 = vunpack.c.h.bf16 %v1593_v13  ;;  %v1719_v10 = vmul.f32 %v3978_v41, %v1643_v23  ;;  %v1644_v51 = vunpack.c.l.bf16 %v1593_v13  ;;  %v1617_v7 = vunpack.c.h.bf16 %v1579_v18 }
 0x1f5   : > { %2705 = vmatprep.subr.bf16.mxu0 %v3038_v40  ;;  %2844 = vmatprep.subr.bf16.mxu1 %v3038_v40  ;;  %v1902_v40 = vpack.c.bf16 %v1856_v30, %v1854_v9  ;;  %v1827_v0 = vmax.f32 %v1763_v25, 0.0  ;;  %v1829_v46 = vmax.f32 %v1765_v17, 0.0  ;;  %v1762_v29 = vadd.f32 %v3980_v50, %v1686_v54 }
 0x1f6   : > { %2142 = vmatprep.mubr.bf16.mxu1 %v1903_v53  ;;  %v1721_v37 = vmul.f32 %v3978_v41, %v1645_v45  ;;  %v1795_v6 = vadd.f32 %v3982_v12, %v1719_v10  ;;  %v1764_v35 = vadd.f32 %v3980_v50, %v1688_v57  ;;  %v1720_v33 = vmul.f32 %v3976_v14, %v1644_v51  ;;  %v1596_v45 = vld [vmem:[%s3970_s24 + $0xb0] sm:$0xff] }
 0x1f7   : > { %v1889_v22 = vpack.c.bf16 %v1829_v46, %v1827_v0  ;;  %v1826_v49 = vmax.f32 %v1762_v29, 0.0  ;;  %v1693_v36 = vmul.f32 %v3978_v41, %v1617_v7  ;;  %v1649_v43 = vunpack.c.h.bf16 %v1595_v4 }
 0x1f8   : > { %2706 = vmatpush3.bf16.msra.mxu0 %v3039_v21  ;;  %2852 = vmatpush3.bf16.msra.mxu1 %v3039_v21  ;;  %v1718_v21 = vmul.f32 %v3976_v14, %v1642_v55  ;;  %v1797_v1 = vadd.f32 %v3982_v12, %v1721_v37  ;;  %v1859_v59 = vmax.f32 %v1795_v6, 0.0  ;;  %v1828_v42 = vmax.f32 %v1764_v35, 0.0  ;;  %v1597_v55 = vld [vmem:[%s3970_s24 + $0xb8] sm:$0xff] }
 0x1f9   : > { %2707 = vmatprep.subr.bf16.mxu0 %v3040_v31  ;;  %2845 = vmatprep.subr.bf16.mxu1 %v3040_v31  ;;  %v1615_v31 = vunpack.c.h.bf16 %v1578_v48  ;;  %v1796_v20 = vadd.f32 %v3980_v50, %v1720_v33  ;;  %v1614_v63 = vunpack.c.l.bf16 %v1578_v48  ;;  %v1769_v28 = vadd.f32 %v3982_v12, %v1693_v36  ;;  %v1583_v36 = vld [vmem:[%s3970_s24 + $0x48] sm:$0xff] }
 0x1fa   : > { %v1794_v38 = vadd.f32 %v3980_v50, %v1718_v21  ;;  %v1861_v47 = vmax.f32 %v1797_v1, 0.0  ;;  %v1725_v16 = vmul.f32 %v3978_v41, %v1649_v43  ;;  %v1616_v44 = vunpack.c.l.bf16 %v1579_v18 }
 0x1fb   : > { %v1691_v58 = vmul.f32 %v3978_v41, %v1615_v31  ;;  %v1860_v52 = vmax.f32 %v1796_v20, 0.0  ;;  %v1690_v56 = vmul.f32 %v3976_v14, %v1614_v63  ;;  %v1646_v9 = vunpack.c.l.bf16 %v1594_v26 }
 0x1fc   : > { %2708 = vmatpush3.bf16.msra.mxu0 %v3041_v5  ;;  %2853 = vmatpush3.bf16.msra.mxu1 %v3041_v5  ;;  %v1858_v19 = vmax.f32 %v1794_v38, 0.0  ;;  %v1647_v5 = vunpack.c.h.bf16 %v1594_v26  ;;  %v1905_v60 = vpack.c.bf16 %v1861_v47, %v1859_v59  ;;  %v1833_v27 = vmax.f32 %v1769_v28, 0.0  ;;  %v1582_v47 = vld [vmem:[%s3970_s24 + $0x40] sm:$0xff] }
 0x1fd   : > { %2709 = vmatprep.subr.bf16.mxu0 %v3042_v62  ;;  %2846 = vmatprep.subr.bf16.mxu1 %v3042_v62  ;;  %v1767_v3 = vadd.f32 %v3982_v12, %v1691_v58  ;;  %v1888_v62 = vpack.c.bf16 %v1828_v42, %v1826_v49  ;;  %v1801_v15 = vadd.f32 %v3982_v12, %v1725_v16  ;;  %v1648_v53 = vunpack.c.l.bf16 %v1595_v4 }
 0x1fe   : > { %v1723_v24 = vmul.f32 %v3978_v41, %v1647_v5  ;;  %v1904_v34 = vpack.c.bf16 %v1860_v52, %v1858_v19  ;;  %v1766_v23 = vadd.f32 %v3980_v50, %v1690_v56  ;;  %v1722_v25 = vmul.f32 %v3976_v14, %v1646_v9 }
 0x1ff   : > { %v1831_v11 = vmax.f32 %v1767_v3, 0.0  ;;  %v1619_v17 = vunpack.c.h.bf16 %v1580_v61  ;;  %v1724_v32 = vmul.f32 %v3976_v14, %v1648_v53  ;;  %v1651_v51 = vunpack.c.h.bf16 %v1596_v45 }
 0x200   : > { %2710 = vmatpush3.bf16.msra.mxu0 %v3043_v39  ;;  %2854 = vmatpush3.bf16.msra.mxu1 %v3043_v39  ;;  %v1799_v13 = vadd.f32 %v3982_v12, %v1723_v24  ;;  %v1692_v39 = vmul.f32 %v3976_v14, %v1616_v44  ;;  %v1830_v48 = vmax.f32 %v1766_v23, 0.0  ;;  %v1798_v0 = vadd.f32 %v3980_v50, %v1722_v25  ;;  %v1598_v24 = vld [vmem:[%s3970_s24 + $0xc0] sm:$0xff]  ;;  %v1599_v44 = vld [vmem:[%s3970_s24 + $0xc8] sm:$0xff] }
 0x201   : > { %v1891_v2 = vpack.c.bf16 %v1833_v27, %v1831_v11  ;;  %v1695_v37 = vmul.f32 %v3978_v41, %v1619_v17  ;;  %v1800_v57 = vadd.f32 %v3980_v50, %v1724_v32  ;;  %v1653_v1 = vunpack.c.h.bf16 %v1597_v55 }
 0x202   : > { %v1863_v30 = vmax.f32 %v1799_v13, 0.0  ;;  %v1768_v10 = vadd.f32 %v3980_v50, %v1692_v39  ;;  %v1862_v21 = vmax.f32 %v1798_v0, 0.0  ;;  %v1727_v26 = vmul.f32 %v3978_v41, %v1651_v51 }
 0x203   : > { %2079 = vmatmul.mubr.bf16.vlgmr.msra.gmra.mxu0 %v1886_v8  ;;  %2143 = vmatmul.mubr.bf16.vlgmr.msra.gmra.mxu1 %v1902_v40  ;;  %v1581_v8 = vld [vmem:[%s3970_s24 + $0x38] sm:$0xff]  ;;  %v1865_v40 = vmax.f32 %v1801_v15, 0.0  ;;  %v1864_v31 = vmax.f32 %v1800_v57, 0.0  ;;  %v1618_v59 = vunpack.c.l.bf16 %v1580_v61  ;;  %v1729_v38 = vmul.f32 %v3978_v41, %v1653_v1 }
 0x204   : > { %2086 = vmatprep.mubr.bf16.mxu0 %v1889_v22  ;;  %2150 = vmatprep.mubr.bf16.mxu1 %v1905_v60  ;;  %v1621_v46 = vunpack.c.h.bf16 %v1581_v8  ;;  %v1832_v6 = vmax.f32 %v1768_v10, 0.0  ;;  %v1771_v22 = vadd.f32 %v3982_v12, %v1695_v37  ;;  %v1620_v4 = vunpack.c.l.bf16 %v1581_v8 }
 0x205   : > { %v1907_v54 = vpack.c.bf16 %v1865_v40, %v1863_v30  ;;  %v1906_v49 = vpack.c.bf16 %v1864_v31, %v1862_v21  ;;  %v1803_v7 = vadd.f32 %v3982_v12, %v1727_v26  ;;  %v1694_v58 = vmul.f32 %v3976_v14, %v1618_v59  ;;  %v1600_v26 = vld [vmem:[%s3970_s24 + $0xd0] sm:$0xff] }
 0x206   : > { %v1697_v18 = vmul.f32 %v3978_v41, %v1621_v46  ;;  %v1890_v29 = vpack.c.bf16 %v1832_v6, %v1830_v48  ;;  %v1835_v33 = vmax.f32 %v1771_v22, 0.0  ;;  %v1650_v42 = vunpack.c.l.bf16 %v1596_v45  ;;  %v1584_v48 = vld [vmem:[%s3970_s24 + $0x50] sm:$0xff] }
 0x207   : > { %v1805_v19 = vadd.f32 %v3982_v12, %v1729_v38  ;;  %v1696_v5 = vmul.f32 %v3976_v14, %v1620_v4  ;;  %v1652_v60 = vunpack.c.l.bf16 %v1597_v55  ;;  %v1867_v3 = vmax.f32 %v1803_v7, 0.0  ;;  %v1601_v4 = vld [vmem:[%s3970_s24 + $0xd8] sm:$0xff] }
 0x208   : > { %v1773_v35 = vadd.f32 %v3982_v12, %v1697_v18  ;;  %v1770_v43 = vadd.f32 %v3980_v50, %v1694_v58  ;;  %v1623_v52 = vunpack.c.h.bf16 %v1582_v47  ;;  %v1625_v13 = vunpack.c.h.bf16 %v1583_v36  ;;  %v1585_v18 = vld [vmem:[%s3970_s24 + $0x58] sm:$0xff] }
 0x209   : > { %v1869_v28 = vmax.f32 %v1805_v19, 0.0  ;;  %v1772_v11 = vadd.f32 %v3980_v50, %v1696_v5  ;;  %v1728_v16 = vmul.f32 %v3976_v14, %v1652_v60  ;;  %v1655_v39 = vunpack.c.h.bf16 %v1598_v24 }
 0x20a   : > { %v1837_v20 = vmax.f32 %v1773_v35, 0.0  ;;  %v1834_v61 = vmax.f32 %v1770_v43, 0.0  ;;  %v1699_v56 = vmul.f32 %v3978_v41, %v1623_v52  ;;  %v1701_v8 = vmul.f32 %v3978_v41, %v1625_v13 }
 0x20b   : > { %2087 = vmatmul.mubr.bf16.gmra.mxu0 %v1888_v62  ;;  %2151 = vmatmul.mubr.bf16.gmra.mxu1 %v1904_v34  ;;  %v1726_v62 = vmul.f32 %v3976_v14, %v1650_v42  ;;  %v1909_v9 = vpack.c.bf16 %v1869_v28, %v1867_v3  ;;  %v1836_v27 = vmax.f32 %v1772_v11, 0.0  ;;  %v1804_v15 = vadd.f32 %v3980_v50, %v1728_v16 }
 0x20c   : > { %2094 = vmatprep.mubr.bf16.mxu0 %v1891_v2  ;;  %2158 = vmatprep.mubr.bf16.mxu1 %v1907_v54  ;;  %v1893_v63 = vpack.c.bf16 %v1837_v20, %v1835_v33  ;;  %v1775_v30 = vadd.f32 %v3982_v12, %v1699_v56  ;;  %v1657_v23 = vunpack.c.h.bf16 %v1599_v44  ;;  %v1731_v45 = vmul.f32 %v3978_v41, %v1655_v39 }
 0x20d   : > { %v1802_v34 = vadd.f32 %v3980_v50, %v1726_v62  ;;  %v1892_v25 = vpack.c.bf16 %v1836_v27, %v1834_v61  ;;  %v1868_v17 = vmax.f32 %v1804_v15, 0.0  ;;  %v1622_v2 = vunpack.c.l.bf16 %v1582_v47  ;;  %v1586_v61 = vld [vmem:[%s3970_s24 + $0x60] sm:$0xff] }
 0x20e   : > { %v1777_v40 = vadd.f32 %v3982_v12, %v1701_v8  ;;  %v1839_v10 = vmax.f32 %v1775_v30, 0.0  ;;  %v1733_v32 = vmul.f32 %v3978_v41, %v1657_v23  ;;  %v1624_v55 = vunpack.c.l.bf16 %v1583_v36  ;;  %v1587_v8 = vld [vmem:[%s3970_s24 + $0x68] sm:$0xff] }
 0x20f   : > { %v1866_v53 = vmax.f32 %v1802_v34, 0.0  ;;  %v1807_v46 = vadd.f32 %v3982_v12, %v1731_v45  ;;  %v1698_v37 = vmul.f32 %v3976_v14, %v1622_v2  ;;  %v1654_v54 = vunpack.c.l.bf16 %v1598_v24  ;;  %v1602_v45 = vld [vmem:[%s3970_s24 + $0xe0] sm:$0xff] }
 0x210   : > { %v1841_v6 = vmax.f32 %v1777_v40, 0.0  ;;  %v1809_v57 = vadd.f32 %v3982_v12, %v1733_v32  ;;  %v1700_v51 = vmul.f32 %v3976_v14, %v1624_v55  ;;  %v1656_v21 = vunpack.c.l.bf16 %v1599_v44  ;;  %v1603_v55 = vld [vmem:[%s3970_s24 + $0xe8] sm:$0xff] }
 0x211   : > { %v1908_v0 = vpack.c.bf16 %v1868_v17, %v1866_v53  ;;  %v1871_v22 = vmax.f32 %v1807_v46, 0.0  ;;  %v1774_v1 = vadd.f32 %v3980_v50, %v1698_v37  ;;  %v1627_v31 = vunpack.c.h.bf16 %v1584_v48 }
 0x212   : > { %v1895_v59 = vpack.c.bf16 %v1841_v6, %v1839_v10  ;;  %v1873_v35 = vmax.f32 %v1809_v57, 0.0  ;;  %v1776_v33 = vadd.f32 %v3980_v50, %v1700_v51  ;;  %v1732_v38 = vmul.f32 %v3976_v14, %v1656_v21 }
 0x213   : > { %2095 = vmatmul.mubr.bf16.gmra.mxu0 %v1890_v29  ;;  %2159 = vmatmul.mubr.bf16.gmra.mxu1 %v1906_v49  ;;  %v1730_v29 = vmul.f32 %v3976_v14, %v1654_v54  ;;  %v1838_v47 = vmax.f32 %v1774_v1, 0.0  ;;  %v1629_v7 = vunpack.c.h.bf16 %v1585_v18  ;;  %v1703_v58 = vmul.f32 %v3978_v41, %v1627_v31 }
 0x214   : > { %2102 = vmatprep.mubr.bf16.mxu0 %v1893_v63  ;;  %2166 = vmatprep.mubr.bf16.mxu1 %v1909_v9  ;;  %v1911_v42 = vpack.c.bf16 %v1873_v35, %v1871_v22  ;;  %v1840_v20 = vmax.f32 %v1776_v33, 0.0  ;;  %v1808_v19 = vadd.f32 %v3980_v50, %v1732_v38  ;;  %v1659_v5 = vunpack.c.h.bf16 %v1600_v26 }
 0x215   : > { %v1806_v49 = vadd.f32 %v3980_v50, %v1730_v29  ;;  %v1705_v36 = vmul.f32 %v3978_v41, %v1629_v7  ;;  %v1779_v3 = vadd.f32 %v3982_v12, %v1703_v58  ;;  %v1661_v43 = vunpack.c.h.bf16 %v1601_v4 }
 0x216   : > { %v1894_v62 = vpack.c.bf16 %v1840_v20, %v1838_v47  ;;  %v1872_v52 = vmax.f32 %v1808_v19, 0.0  ;;  %v1735_v24 = vmul.f32 %v3978_v41, %v1659_v5  ;;  %v1626_v63 = vunpack.c.l.bf16 %v1584_v48  ;;  %v1588_v47 = vld [vmem:[%s3970_s24 + $0x70] sm:$0xff] }
 0x217   : > { %v1870_v60 = vmax.f32 %v1806_v49, 0.0  ;;  %v1781_v28 = vadd.f32 %v3982_v12, %v1705_v36  ;;  %v1843_v11 = vmax.f32 %v1779_v3, 0.0  ;;  %v1737_v16 = vmul.f32 %v3978_v41, %v1661_v43  ;;  %v1589_v36 = vld [vmem:[%s3970_s24 + $0x78] sm:$0xff] }
 0x218   : > { %v1628_v44 = vunpack.c.l.bf16 %v1585_v18  ;;  %v1811_v13 = vadd.f32 %v3982_v12, %v1735_v24  ;;  %v1702_v56 = vmul.f32 %v3976_v14, %v1626_v63  ;;  %v1658_v9 = vunpack.c.l.bf16 %v1600_v26  ;;  %v1604_v24 = vld [vmem:[%s3970_s24 + $0xf0] sm:$0xff] }
 0x219   : > { %v1910_v34 = vpack.c.bf16 %v1872_v52, %v1870_v60  ;;  %v1845_v27 = vmax.f32 %v1781_v28, 0.0  ;;  %v1813_v15 = vadd.f32 %v3982_v12, %v1737_v16  ;;  %v1660_v53 = vunpack.c.l.bf16 %v1601_v4 }
 0x21a   : > { %v1704_v39 = vmul.f32 %v3976_v14, %v1628_v44  ;;  %v1875_v30 = vmax.f32 %v1811_v13, 0.0  ;;  %v1778_v23 = vadd.f32 %v3980_v50, %v1702_v56  ;;  %v1631_v17 = vunpack.c.h.bf16 %v1586_v61  ;;  %v1605_v44 = vld [vmem:[%s3970_s24 + $0xf8] sm:$0xff] }
 0x21b   : > { %2103 = vmatmul.mubr.bf16.gmra.mxu0 %v1892_v25  ;;  %2167 = vmatmul.mubr.bf16.gmra.mxu1 %v1908_v0  ;;  %v1734_v25 = vmul.f32 %v3976_v14, %v1658_v9  ;;  %v1897_v2 = vpack.c.bf16 %v1845_v27, %v1843_v11  ;;  %v1877_v40 = vmax.f32 %v1813_v15, 0.0  ;;  %v1736_v32 = vmul.f32 %v3976_v14, %v1660_v53 }
 0x21c   : > { %2110 = vmatprep.mubr.bf16.mxu0 %v1895_v59  ;;  %2174 = vmatprep.mubr.bf16.mxu1 %v1911_v42  ;;  %v1780_v10 = vadd.f32 %v3980_v50, %v1704_v39  ;;  %v1842_v48 = vmax.f32 %v1778_v23, 0.0  ;;  %v1633_v46 = vunpack.c.h.bf16 %v1587_v8  ;;  %v1707_v37 = vmul.f32 %v3978_v41, %v1631_v17 }
 0x21d   : > { %v1810_v0 = vadd.f32 %v3980_v50, %v1734_v25  ;;  %v1913_v54 = vpack.c.bf16 %v1877_v40, %v1875_v30  ;;  %v1812_v57 = vadd.f32 %v3980_v50, %v1736_v32  ;;  %v1663_v51 = vunpack.c.h.bf16 %v1602_v45 }
 0x21e   : > { %v1844_v6 = vmax.f32 %v1780_v10, 0.0  ;;  %v1709_v18 = vmul.f32 %v3978_v41, %v1633_v46  ;;  %v1783_v22 = vadd.f32 %v3982_v12, %v1707_v37  ;;  %v1665_v1 = vunpack.c.h.bf16 %v1603_v55 }
 0x21f   : > { %v1874_v21 = vmax.f32 %v1810_v0, 0.0  ;;  %v1876_v31 = vmax.f32 %v1812_v57, 0.0  ;;  %v1739_v26 = vmul.f32 %v3978_v41, %v1663_v51  ;;  %v1630_v59 = vunpack.c.l.bf16 %v1586_v61 }
 0x220   : > { %v1896_v29 = vpack.c.bf16 %v1844_v6, %v1842_v48  ;;  %v1785_v35 = vadd.f32 %v3982_v12, %v1709_v18  ;;  %v1847_v33 = vmax.f32 %v1783_v22, 0.0  ;;  %v1741_v38 = vmul.f32 %v3978_v41, %v1665_v1 }
 0x221   : > { %v1632_v4 = vunpack.c.l.bf16 %v1587_v8  ;;  %v1912_v49 = vpack.c.bf16 %v1876_v31, %v1874_v21  ;;  %v1815_v7 = vadd.f32 %v3982_v12, %v1739_v26  ;;  %v1706_v58 = vmul.f32 %v3976_v14, %v1630_v59 }
 0x222   : > { %v1662_v42 = vunpack.c.l.bf16 %v1602_v45  ;;  %v1849_v20 = vmax.f32 %v1785_v35, 0.0  ;;  %v1817_v19 = vadd.f32 %v3982_v12, %v1741_v38  ;;  %v1664_v60 = vunpack.c.l.bf16 %v1603_v55 }
 0x223   : > { %2111 = vmatmul.mubr.bf16.gmra.mxu0 %v1894_v62  ;;  %2175 = vmatmul.mubr.bf16.gmra.mxu1 %v1910_v34  ;;  %v1708_v5 = vmul.f32 %v3976_v14, %v1632_v4  ;;  %v1879_v3 = vmax.f32 %v1815_v7, 0.0  ;;  %v1782_v43 = vadd.f32 %v3980_v50, %v1706_v58  ;;  %v1635_v52 = vunpack.c.h.bf16 %v1588_v47 }
 0x224   : > { %2118 = vmatprep.mubr.bf16.mxu0 %v1897_v2  ;;  %2182 = vmatprep.mubr.bf16.mxu1 %v1913_v54  ;;  %v1738_v62 = vmul.f32 %v3976_v14, %v1662_v42  ;;  %v1899_v63 = vpack.c.bf16 %v1849_v20, %v1847_v33  ;;  %v1881_v28 = vmax.f32 %v1817_v19, 0.0  ;;  %v1740_v16 = vmul.f32 %v3976_v14, %v1664_v60 }
 0x225   : > { %v1784_v11 = vadd.f32 %v3980_v50, %v1708_v5  ;;  %v1846_v61 = vmax.f32 %v1782_v43, 0.0  ;;  %v1637_v13 = vunpack.c.h.bf16 %v1589_v36  ;;  %v1711_v56 = vmul.f32 %v3978_v41, %v1635_v52 }
 0x226   : > { %v1814_v34 = vadd.f32 %v3980_v50, %v1738_v62  ;;  %v1915_v9 = vpack.c.bf16 %v1881_v28, %v1879_v3  ;;  %v1816_v15 = vadd.f32 %v3980_v50, %v1740_v16  ;;  %v1667_v39 = vunpack.c.h.bf16 %v1604_v24 }
 0x227   : > { %v1848_v27 = vmax.f32 %v1784_v11, 0.0  ;;  %v1713_v8 = vmul.f32 %v3978_v41, %v1637_v13  ;;  %v1787_v30 = vadd.f32 %v3982_v12, %v1711_v56  ;;  %v1669_v23 = vunpack.c.h.bf16 %v1605_v44 }
 0x228   : > { %v1878_v53 = vmax.f32 %v1814_v34, 0.0  ;;  %v1880_v17 = vmax.f32 %v1816_v15, 0.0  ;;  %v1743_v45 = vmul.f32 %v3978_v41, %v1667_v39  ;;  %v1634_v2 = vunpack.c.l.bf16 %v1588_v47 }
 0x229   : > { %v1898_v25 = vpack.c.bf16 %v1848_v27, %v1846_v61  ;;  %v1789_v40 = vadd.f32 %v3982_v12, %v1713_v8  ;;  %v1851_v10 = vmax.f32 %v1787_v30, 0.0  ;;  %v1745_v32 = vmul.f32 %v3978_v41, %v1669_v23 }
 0x22a   : > { %v1636_v55 = vunpack.c.l.bf16 %v1589_v36  ;;  %v1914_v48 = vpack.c.bf16 %v1880_v17, %v1878_v53  ;;  %v1819_v0 = vadd.f32 %v3982_v12, %v1743_v45  ;;  %v1710_v46 = vmul.f32 %v3976_v14, %v1634_v2 }
 0x22b   : > { %2119 = vmatmul.mubr.bf16.gmra.mxu0 %v1896_v29  ;;  %2183 = vmatmul.mubr.bf16.gmra.mxu1 %v1912_v49  ;;  %v1666_v37 = vunpack.c.l.bf16 %v1604_v24  ;;  %v1853_v54 = vmax.f32 %v1789_v40, 0.0  ;;  %v1821_v6 = vadd.f32 %v3982_v12, %v1745_v32  ;;  %v1668_v51 = vunpack.c.l.bf16 %v1605_v44 }
 0x22c   : > { %2126 = vmatprep.mubr.bf16.mxu0 %v1899_v63  ;;  %2190 = vmatprep.mubr.bf16.mxu1 %v1915_v9  ;;  %v1712_v57 = vmul.f32 %v3976_v14, %v1636_v55  ;;  %v1883_v21 = vmax.f32 %v1819_v0, 0.0  ;;  %v1786_v18 = vadd.f32 %v3980_v50, %v1710_v46 }
 0x22d   : > { %v1742_v41 = vmul.f32 %v3976_v14, %v1666_v37  ;;  %v1901_v22 = vpack.c.bf16 %v1853_v54, %v1851_v10  ;;  %v1885_v1 = vmax.f32 %v1821_v6, 0.0  ;;  %v1744_v31 = vmul.f32 %v3976_v14, %v1668_v51 }
 0x22e   : > { %v1788_v29 = vadd.f32 %v3980_v50, %v1712_v57  ;;  %v1850_v26 = vmax.f32 %v1786_v18, 0.0 }
 0x22f   : > { %v1818_v59 = vadd.f32 %v3980_v50, %v1742_v41  ;;  %v1917_v12 = vpack.c.bf16 %v1885_v1, %v1883_v21  ;;  %v1820_v33 = vadd.f32 %v3980_v50, %v1744_v31 }
 0x230   : > { %v1852_v35 = vmax.f32 %v1788_v29, 0.0 }
 0x231   : > { %v1882_v38 = vmax.f32 %v1818_v59, 0.0  ;;  %v1884_v47 = vmax.f32 %v1820_v33, 0.0 }
 0x232   : > { %v1900_v4 = vpack.c.bf16 %v1852_v35, %v1850_v26 }
 0x233   : > { %2127 = vmatmul.mubr.bf16.gmra.mxu0 %v1898_v25  ;;  %2191 = vmatmul.mubr.bf16.gmra.mxu1 %v1914_v48  ;;  %v1916_v49 = vpack.c.bf16 %v1884_v47, %v1882_v38 }
 0x234   : > { %2134 = vmatprep.mubr.bf16.mxu0 %v1901_v22  ;;  %2198 = vmatprep.mubr.bf16.mxu1 %v1917_v12 }
 0x23b   : > { %2135 = vmatmul.mubr.bf16.gmra.mxu0 %v1900_v4  ;;  %2199 = vmatmul.mubr.bf16.gmra.mxu1 %v1916_v49 }
 0x2c3   : > { %v2711_v7 = vpop.f32.mrf.mxu0  ;;  %v2759_v58 = vpop.f32.mrf.mxu1 }
 0x2c5   : > { %v2712_v42 = vpop.f32.mrf.mxu0  ;;  %v2760_v20 = vpop.f32.mrf.mxu1 }
 0x2c6   : > { %v4159_v14 = vadd.f32 %v2712_v42, %v2711_v7  ;;  %v4161_v60 = vadd.f32 %v2760_v20, %v2759_v58 }
 0x2c7   : > { %v2714_v19 = vpop.f32.mrf.mxu0  ;;  %v2762_v5 = vpop.f32.mrf.mxu1 }
 0x2c8   : > { %v2207_v50 = vmul.f32 %v4159_v14, %v4159_v14  ;;  %v2223_v28 = vmul.f32 %v4161_v60, %v4161_v60 }
 0x2c9   : > { %v2715_v36 = vpop.f32.mrf.mxu0  ;;  %v2763_v3 = vpop.f32.mrf.mxu1 }
 0x2ca   : > { %v4165_v43 = vadd.f32 %v2763_v3, %v2762_v5  ;;  %2239 = vadd.xlane.f32.xlu0 %v2207_v50  ;;  %v4167_v24 = vadd.f32 %v2715_v36, %v2714_v19 }
 0x2cb   : > { %v2717_v62 = vpop.f32.mrf.mxu0  ;;  %v2765_v52 = vpop.f32.mrf.mxu1 }
 0x2cc   : > { %v2224_v63 = vmul.f32 %v4165_v43, %v4165_v43  ;;  %v2208_v9 = vmul.f32 %v4167_v24, %v4167_v24 }
 0x2cd   : > { %v2718_v11 = vpop.f32.mrf.mxu0  ;;  %v2766_v16 = vpop.f32.mrf.mxu1 }
 0x2ce   : > { %v4173_v44 = vadd.f32 %v2718_v11, %v2717_v62  ;;  %2273 = vadd.xlane.f32.xlu1 %v2224_v63  ;;  %2271 = vadd.xlane.f32.xlu0 %v2223_v28  ;;  %v4175_v13 = vadd.f32 %v2766_v16, %v2765_v52 }
 0x2cf   : > { %v2720_v61 = vpop.f32.mrf.mxu0  ;;  %v2768_v34 = vpop.f32.mrf.mxu1 }
 0x2d0   : > { %v2209_v56 = vmul.f32 %v4173_v44, %v4173_v44  ;;  %v2225_v25 = vmul.f32 %v4175_v13, %v4175_v13 }
 0x2d1   : > { %v2721_v27 = vpop.f32.mrf.mxu0  ;;  %v2769_v15 = vpop.f32.mrf.mxu1 }
 0x2d2   : > { %v4181_v39 = vadd.f32 %v2721_v27, %v2720_v61  ;;  %2243 = vadd.xlane.f32.xlu1 %v2209_v56  ;;  %2241 = vadd.xlane.f32.xlu0 %v2208_v9  ;;  %v4183_v30 = vadd.f32 %v2769_v15, %v2768_v34 }
 0x2d3   : > { %v2723_v53 = vpop.f32.mrf.mxu0  ;;  %v2771_v8 = vpop.f32.mrf.mxu1 }
 0x2d4   : > { %v2210_v23 = vmul.f32 %v4181_v39, %v4181_v39  ;;  %v2226_v55 = vmul.f32 %v4183_v30, %v4183_v30 }
 0x2d5   : > { %v2724_v17 = vpop.f32.mrf.mxu0  ;;  %v2772_v45 = vpop.f32.mrf.mxu1 }
 0x2d6   : > { %v4189_v2 = vadd.f32 %v2724_v17, %v2723_v53  ;;  %2245 = vadd.xlane.f32.xlu1 %v2210_v23  ;;  %2275 = vadd.xlane.f32.xlu0 %v2225_v25  ;;  %v4191_v32 = vadd.f32 %v2772_v45, %v2771_v8 }
 0x2d7   : > { %v2726_v40 = vpop.f32.mrf.mxu0  ;;  %v2774_v10 = vpop.f32.mrf.mxu1 }
 0x2d8   : > { %v2211_v48 = vmul.f32 %v4189_v2, %v4189_v2  ;;  %v2227_v21 = vmul.f32 %v4191_v32, %v4191_v32 }
 0x2d9   : > { %v2727_v0 = vpop.f32.mrf.mxu0  ;;  %v2775_v46 = vpop.f32.mrf.mxu1 }
 0x2da   : > { %v4197_v37 = vadd.f32 %v2727_v0, %v2726_v40  ;;  %2277 = vadd.xlane.f32.xlu1 %v2226_v55  ;;  %2247 = vadd.xlane.f32.xlu0 %v2211_v48  ;;  %v4199_v6 = vadd.f32 %v2775_v46, %v2774_v10 }
 0x2db   : > { %v2729_v54 = vpop.f32.mrf.mxu0  ;;  %v2777_v57 = vpop.f32.mrf.mxu1 }
 0x2dc   : > { %v2212_v51 = vmul.f32 %v4197_v37, %v4197_v37  ;;  %v2228_v26 = vmul.f32 %v4199_v6, %v4199_v6 }
 0x2dd   : > { %v2730_v18 = vpop.f32.mrf.mxu0  ;;  %v2778_v22 = vpop.f32.mrf.mxu1 }
 0x2de   : > { %v4205_v41 = vadd.f32 %v2730_v18, %v2729_v54  ;;  %2249 = vadd.xlane.f32.xlu1 %v2212_v51  ;;  %2279 = vadd.xlane.f32.xlu0 %v2227_v21  ;;  %v4207_v29 = vadd.f32 %v2778_v22, %v2777_v57 }
 0x2df   : > { %v2732_v1 = vpop.f32.mrf.mxu0  ;;  %v2780_v31 = vpop.f32.mrf.mxu1 }
 0x2e0   : > { %v2213_v59 = vmul.f32 %v4205_v41, %v4205_v41  ;;  %v2229_v49 = vmul.f32 %v4207_v29, %v4207_v29 }
 0x2e1   : > { %v2733_v12 = vpop.f32.mrf.mxu0  ;;  %v2781_v33 = vpop.f32.mrf.mxu1 }
 0x2e2   : > { %v4213_v35 = vadd.f32 %v2733_v12, %v2732_v1  ;;  %2281 = vadd.xlane.f32.xlu1 %v2228_v26  ;;  %2251 = vadd.xlane.f32.xlu0 %v2213_v59  ;;  %v4215_v4 = vadd.f32 %v2781_v33, %v2780_v31 }
 0x2e3   : > { %v2735_v38 = vpop.f32.mrf.mxu0  ;;  %v2783_v7 = vpop.f32.mrf.mxu1 }
 0x2e4   : > { %v2214_v47 = vmul.f32 %v4213_v35, %v4213_v35  ;;  %v2230_v50 = vmul.f32 %v4215_v4, %v4215_v4 }
 0x2e5   : > { %v2736_v58 = vpop.f32.mrf.mxu0  ;;  %v2784_v20 = vpop.f32.mrf.mxu1 }
 0x2e6   : > { %v4221_v42 = vadd.f32 %v2736_v58, %v2735_v38  ;;  %2253 = vadd.xlane.f32.xlu1 %v2214_v47  ;;  %2283 = vadd.xlane.f32.xlu0 %v2229_v49  ;;  %v4223_v5 = vadd.f32 %v2784_v20, %v2783_v7 }
 0x2e7   : > { %v2738_v19 = vpop.f32.mrf.mxu0  ;;  %v2786_v3 = vpop.f32.mrf.mxu1 }
 0x2e8   : > { %v2215_v36 = vmul.f32 %v4221_v42, %v4221_v42  ;;  %v2231_v61 = vmul.f32 %v4223_v5, %v4223_v5 }
 0x2e9   : > { %v2739_v62 = vpop.f32.mrf.mxu0  ;;  %v2787_v63 = vpop.f32.mrf.mxu1 }
 0x2ea   : > { %v4229_v52 = vadd.f32 %v2739_v62, %v2738_v19  ;;  %2285 = vadd.xlane.f32.xlu1 %v2230_v50  ;;  %2255 = vadd.xlane.f32.xlu0 %v2215_v36  ;;  %v4231_v28 = vadd.f32 %v2787_v63, %v2786_v3 }
 0x2eb   : > { %v2741_v11 = vpop.f32.mrf.mxu0  ;;  %v2789_v34 = vpop.f32.mrf.mxu1 }
 0x2ec   : > { %v2216_v16 = vmul.f32 %v4229_v52, %v4229_v52  ;;  %v2232_v53 = vmul.f32 %v4231_v28, %v4231_v28 }
 0x2ed   : > { %v2742_v56 = vpop.f32.mrf.mxu0  ;;  %v2790_v27 = vpop.f32.mrf.mxu1 }
 0x2ee   : > { %2257 = vadd.xlane.f32.xlu1 %v2216_v16  ;;  %2287 = vadd.xlane.f32.xlu0 %v2231_v61  ;;  %v4237_v9 = vadd.f32 %v2742_v56, %v2741_v11  ;;  %v4241_v8 = vadd.f32 %v2790_v27, %v2789_v34 }
 0x2ef   : > { %v2744_v15 = vpop.f32.mrf.mxu0  ;;  %v2792_v25 = vpop.f32.mrf.mxu1 }
 0x2f0   : > { %v2217_v23 = vmul.f32 %v4237_v9, %v4237_v9  ;;  %v2233_v0 = vmul.f32 %v4241_v8, %v4241_v8 }
 0x2f1   : > { %v2745_v17 = vpop.f32.mrf.mxu0  ;;  %v2793_v40 = vpop.f32.mrf.mxu1 }
 0x2f2   : > { %2289 = vadd.xlane.f32.xlu1 %v2232_v53  ;;  %v4245_v45 = vadd.f32 %v2745_v17, %v2744_v15  ;;  %2259 = vadd.xlane.f32.xlu0 %v2217_v23  ;;  %v4247_v10 = vadd.f32 %v2793_v40, %v2792_v25 }
 0x2f3   : > { %v2747_v55 = vpop.f32.mrf.mxu0  ;;  %v2795_v46 = vpop.f32.mrf.mxu1 }
 0x2f4   : > { %v2218_v48 = vmul.f32 %v4245_v45, %v4245_v45  ;;  %v2234_v18 = vmul.f32 %v4247_v10, %v4247_v10 }
 0x2f5   : > { %v2748_v54 = vpop.f32.mrf.mxu0  ;;  %v2796_v51 = vpop.f32.mrf.mxu1 }
 0x2f6   : > { %2261 = vadd.xlane.f32.xlu1 %v2218_v48  ;;  %2291 = vadd.xlane.f32.xlu0 %v2233_v0  ;;  %v4253_v57 = vadd.f32 %v2748_v54, %v2747_v55  ;;  %v4257_v22 = vadd.f32 %v2796_v51, %v2795_v46 }
 0x2f7   : > { %v2750_v21 = vpop.f32.mrf.mxu0  ;;  %v2798_v31 = vpop.f32.mrf.mxu1 }
 0x2f8   : > { %v2219_v1 = vmul.f32 %v4253_v57, %v4253_v57  ;;  %v2235_v49 = vmul.f32 %v4257_v22, %v4257_v22 }
 0x2f9   : > { %v2751_v26 = vpop.f32.mrf.mxu0  ;;  %v2799_v12 = vpop.f32.mrf.mxu1 }
 0x2fa   : > { %2293 = vadd.xlane.f32.xlu1 %v2234_v18  ;;  %v4261_v59 = vadd.f32 %v2751_v26, %v2750_v21  ;;  %2263 = vadd.xlane.f32.xlu0 %v2219_v1  ;;  %v4263_v33 = vadd.f32 %v2799_v12, %v2798_v31 }
 0x2fb   : > { %v2753_v38 = vpop.f32.mrf.mxu0  ;;  %v2801_v7 = vpop.f32.mrf.mxu1 }
 0x2fc   : > { %v2220_v47 = vmul.f32 %v4261_v59, %v4261_v59  ;;  %v2236_v36 = vmul.f32 %v4263_v33, %v4263_v33 }
 0x2fd   : > { %v2754_v58 = vpop.f32.mrf.mxu0  ;;  %v2802_v19 = vpop.f32.mrf.mxu1 }
 0x2fe   : > { %2265 = vadd.xlane.f32.xlu1 %v2220_v47  ;;  %2295 = vadd.xlane.f32.xlu0 %v2235_v49  ;;  %v4269_v20 = vadd.f32 %v2754_v58, %v2753_v38  ;;  %v4273_v3 = vadd.f32 %v2802_v19, %v2801_v7 }
 0x2ff   : > { %v2756_v50 = vpop.f32.mrf.mxu0  ;;  %v2804_v63 = vpop.f32.mrf.mxu1 }
 0x300   : > { %v2221_v62 = vmul.f32 %v4269_v20, %v4269_v20  ;;  %v2237_v27 = vmul.f32 %v4273_v3, %v4273_v3 }
 0x301   : > { %v2757_v11 = vpop.f32.mrf.mxu0  ;;  %v2805_v61 = vpop.f32.mrf.mxu1 }
 0x302   : > { %2297 = vadd.xlane.f32.xlu1 %v2236_v36  ;;  %v4277_v16 = vadd.f32 %v2757_v11, %v2756_v50  ;;  %2267 = vadd.xlane.f32.xlu0 %v2221_v62  ;;  %v4279_v34 = vadd.f32 %v2805_v61, %v2804_v63 }
 0x304   : > { %v2222_v56 = vmul.f32 %v4277_v16, %v4277_v16  ;;  %v2238_v15 = vmul.f32 %v4279_v34, %v4279_v34 }
 0x306   : > { %2269 = vadd.xlane.f32.xlu1 %v2222_v56  ;;  %2299 = vadd.xlane.f32.xlu0 %v2237_v27 }
 0x30a   : > { %2301 = vadd.xlane.f32.xlu1 %v2238_v15 }
 0x353   : > { %v2240_v53 = vpop.xlane.xlu0 %2239 }
 0x354   : > { %v2303_v23 = vmax.f32 %v2240_v53, 1e-24 }
 0x356   : > { %3044 = vrsqrt.f32 %v2303_v23 }
 0x357   : > { %v2274_v25 = vpop.xlane.xlu1 %2273  ;;  %v2272_v17 = vpop.xlane.xlu0 %2271 }
 0x358   : > { %v2320_v40 = vmax.f32 %v2274_v25, 1e-24  ;;  %v2319_v55 = vmax.f32 %v2272_v17, 1e-24 }
 0x35a   : > { %3046 = vrsqrt.f32 %v2320_v40 }
 0x35b   : > { %3048 = vrsqrt.f32 %v2319_v55  ;;  %v2244_v48 = vpop.xlane.xlu1 %2243  ;;  %v2242_v0 = vpop.xlane.xlu0 %2241 }
 0x35c   : > { %v2305_v46 = vmax.f32 %v2244_v48, 1e-24  ;;  %v2304_v54 = vmax.f32 %v2242_v0, 1e-24 }
 0x35e   : > { %3050 = vrsqrt.f32 %v2305_v46 }
 0x35f   : > { %3052 = vrsqrt.f32 %v2304_v54  ;;  %v2246_v51 = vpop.xlane.xlu1 %2245  ;;  %v2276_v21 = vpop.xlane.xlu0 %2275 }
 0x360   : > { %v2306_v18 = vmax.f32 %v2246_v51, 1e-24  ;;  %v2321_v1 = vmax.f32 %v2276_v21, 1e-24 }
 0x362   : > { %3054 = vrsqrt.f32 %v2306_v18 }
 0x363   : > { %v3045_v31 = vpop.eup %3044  ;;  %3056 = vrsqrt.f32 %v2321_v1  ;;  %v2278_v26 = vpop.xlane.xlu1 %2277 }
 0x364   : > { %v2248_v12 = vpop.xlane.xlu0 %2247  ;;  %v2367_v38 = vmul.f32 %v3045_v31, %v4159_v14  ;;  %v2322_v47 = vmax.f32 %v2278_v26, 1e-24 }
 0x365   : > { %v2307_v49 = vmax.f32 %v2248_v12, 1e-24 }
 0x366   : > { %2399 = vst [vmem:[%s3486_s5] sm:$0xff] %v2367_v38  ;;  %3058 = vrsqrt.f32 %v2322_v47 }
 0x367   : > { %v3047_v7 = vpop.eup %3046  ;;  %3060 = vrsqrt.f32 %v2307_v49  ;;  %v2250_v58 = vpop.xlane.xlu1 %2249 }
 0x368   : > { %v2280_v19 = vpop.xlane.xlu0 %2279  ;;  %v3049_v50 = vpop.eup %3048  ;;  %v2384_v36 = vmul.f32 %v3047_v7, %v4165_v43  ;;  %v2308_v62 = vmax.f32 %v2250_v58, 1e-24 }
 0x369   : > { %v2323_v63 = vmax.f32 %v2280_v19, 1e-24  ;;  %v2383_v11 = vmul.f32 %v3049_v50, %v4161_v60 }
 0x36a   : > { %2416 = vst [vmem:[%s3486_s5 + $0x88] sm:$0xff] %v2384_v36  ;;  %3062 = vrsqrt.f32 %v2308_v62 }
 0x36b   : > { %v3051_v14 = vpop.eup %3050  ;;  %2415 = vst [vmem:[%s3486_s5 + $0x80] sm:$0xff] %v2383_v11  ;;  %3064 = vrsqrt.f32 %v2323_v63  ;;  %v2282_v61 = vpop.xlane.xlu1 %2281 }
 0x36c   : > { %v2252_v56 = vpop.xlane.xlu0 %2251  ;;  %v3053_v27 = vpop.eup %3052  ;;  %v2369_v15 = vmul.f32 %v3051_v14, %v4173_v44  ;;  %v2324_v53 = vmax.f32 %v2282_v61, 1e-24 }
 0x36d   : > { %v2309_v23 = vmax.f32 %v2252_v56, 1e-24  ;;  %v2368_v43 = vmul.f32 %v3053_v27, %v4167_v24 }
 0x36e   : > { %2401 = vst [vmem:[%s3486_s5 + $0x10] sm:$0xff] %v2369_v15  ;;  %3066 = vrsqrt.f32 %v2324_v53 }
 0x36f   : > { %v3055_v60 = vpop.eup %3054  ;;  %2400 = vst [vmem:[%s3486_s5 + $0x8] sm:$0xff] %v2368_v43  ;;  %3068 = vrsqrt.f32 %v2309_v23  ;;  %v2254_v25 = vpop.xlane.xlu1 %2253 }
 0x370   : > { %v2284_v17 = vpop.xlane.xlu0 %2283  ;;  %v3057_v40 = vpop.eup %3056  ;;  %v2370_v55 = vmul.f32 %v3055_v60, %v4181_v39  ;;  %v2310_v48 = vmax.f32 %v2254_v25, 1e-24 }
 0x371   : > { %v2325_v0 = vmax.f32 %v2284_v17, 1e-24  ;;  %v2385_v44 = vmul.f32 %v3057_v40, %v4175_v13 }
 0x372   : > { %2402 = vst [vmem:[%s3486_s5 + $0x18] sm:$0xff] %v2370_v55  ;;  %3070 = vrsqrt.f32 %v2310_v48 }
 0x373   : > { %v3059_v24 = vpop.eup %3058  ;;  %2417 = vst [vmem:[%s3486_s5 + $0x90] sm:$0xff] %v2385_v44  ;;  %3072 = vrsqrt.f32 %v2325_v0  ;;  %v2286_v46 = vpop.xlane.xlu1 %2285 }
 0x374   : > { %v2256_v54 = vpop.xlane.xlu0 %2255  ;;  %v3061_v51 = vpop.eup %3060  ;;  %v2386_v21 = vmul.f32 %v3059_v24, %v4183_v30  ;;  %v2326_v18 = vmax.f32 %v2286_v46, 1e-24 }
 0x375   : > { %v2311_v1 = vmax.f32 %v2256_v54, 1e-24  ;;  %v2371_v39 = vmul.f32 %v3061_v51, %v4189_v2 }
 0x376   : > { %2418 = vst [vmem:[%s3486_s5 + $0x98] sm:$0xff] %v2386_v21  ;;  %3074 = vrsqrt.f32 %v2326_v18 }
 0x377   : > { %v3063_v13 = vpop.eup %3062  ;;  %2403 = vst [vmem:[%s3486_s5 + $0x20] sm:$0xff] %v2371_v39  ;;  %3076 = vrsqrt.f32 %v2311_v1  ;;  %v2258_v31 = vpop.xlane.xlu1 %2257 }
 0x378   : > { %v2288_v26 = vpop.xlane.xlu0 %2287  ;;  %v3065_v12 = vpop.eup %3064  ;;  %v2372_v38 = vmul.f32 %v3063_v13, %v4197_v37  ;;  %v2312_v47 = vmax.f32 %v2258_v31, 1e-24 }
 0x379   : > { %v2327_v49 = vmax.f32 %v2288_v26, 1e-24  ;;  %v2387_v30 = vmul.f32 %v3065_v12, %v4191_v32 }
 0x37a   : > { %2404 = vst [vmem:[%s3486_s5 + $0x28] sm:$0xff] %v2372_v38  ;;  %3078 = vrsqrt.f32 %v2312_v47 }
 0x37b   : > { %v3067_v2 = vpop.eup %3066  ;;  %2419 = vst [vmem:[%s3486_s5 + $0xa0] sm:$0xff] %v2387_v30  ;;  %3080 = vrsqrt.f32 %v2327_v49  ;;  %v2290_v7 = vpop.xlane.xlu1 %2289 }
 0x37c   : > { %v3069_v58 = vpop.eup %3068  ;;  %v2388_v19 = vmul.f32 %v3067_v2, %v4199_v6  ;;  %v2328_v50 = vmax.f32 %v2290_v7, 1e-24  ;;  %v2260_v36 = vpop.xlane.xlu0 %2259 }
 0x37d   : > { %v2373_v37 = vmul.f32 %v3069_v58, %v4205_v41  ;;  %v2313_v62 = vmax.f32 %v2260_v36, 1e-24 }
 0x37e   : > { %2420 = vst [vmem:[%s3486_s5 + $0xa8] sm:$0xff] %v2388_v19  ;;  %3082 = vrsqrt.f32 %v2328_v50 }
 0x37f   : > { %v3071_v32 = vpop.eup %3070  ;;  %2405 = vst [vmem:[%s3486_s5 + $0x30] sm:$0xff] %v2373_v37  ;;  %3084 = vrsqrt.f32 %v2313_v62  ;;  %v2262_v14 = vpop.xlane.xlu1 %2261 }
 0x380   : > { %v3073_v63 = vpop.eup %3072  ;;  %v2374_v11 = vmul.f32 %v3071_v32, %v4213_v35  ;;  %v2292_v61 = vpop.xlane.xlu0 %2291  ;;  %v2314_v56 = vmax.f32 %v2262_v14, 1e-24 }
 0x381   : > { %v2389_v6 = vmul.f32 %v3073_v63, %v4207_v29  ;;  %v2329_v27 = vmax.f32 %v2292_v61, 1e-24 }
 0x382   : > { %2406 = vst [vmem:[%s3486_s5 + $0x38] sm:$0xff] %v2374_v11  ;;  %3086 = vrsqrt.f32 %v2314_v56 }
 0x383   : > { %v3075_v41 = vpop.eup %3074  ;;  %2421 = vst [vmem:[%s3486_s5 + $0xb0] sm:$0xff] %v2389_v6  ;;  %3088 = vrsqrt.f32 %v2329_v27  ;;  %v2294_v23 = vpop.xlane.xlu1 %2293 }
 0x384   : > { %v3077_v15 = vpop.eup %3076  ;;  %v2390_v53 = vmul.f32 %v3075_v41, %v4215_v4  ;;  %v2330_v43 = vmax.f32 %v2294_v23, 1e-24  ;;  %v2264_v60 = vpop.xlane.xlu0 %2263 }
 0x385   : > { %v2375_v35 = vmul.f32 %v3077_v15, %v4221_v42  ;;  %v2315_v29 = vmax.f32 %v2264_v60, 1e-24 }
 0x386   : > { %2422 = vst [vmem:[%s3486_s5 + $0xb8] sm:$0xff] %v2390_v53  ;;  %3090 = vrsqrt.f32 %v2330_v43 }
 0x387   : > { %v3079_v25 = vpop.eup %3078  ;;  %2407 = vst [vmem:[%s3486_s5 + $0x40] sm:$0xff] %v2375_v35  ;;  %3092 = vrsqrt.f32 %v2315_v29  ;;  %v2266_v55 = vpop.xlane.xlu1 %2265 }
 0x388   : > { %v3081_v17 = vpop.eup %3080  ;;  %v2376_v40 = vmul.f32 %v3079_v25, %v4229_v52  ;;  %v2296_v48 = vpop.xlane.xlu0 %2295  ;;  %v2316_v42 = vmax.f32 %v2266_v55, 1e-24 }
 0x389   : > { %v2391_v4 = vmul.f32 %v3081_v17, %v4223_v5  ;;  %v2331_v0 = vmax.f32 %v2296_v48, 1e-24 }
 0x38a   : > { %2408 = vst [vmem:[%s3486_s5 + $0x48] sm:$0xff] %v2376_v40  ;;  %3094 = vrsqrt.f32 %v2316_v42 }
 0x38b   : > { %v3083_v44 = vpop.eup %3082  ;;  %2423 = vst [vmem:[%s3486_s5 + $0xc0] sm:$0xff] %v2391_v4  ;;  %3096 = vrsqrt.f32 %v2331_v0  ;;  %v2298_v52 = vpop.xlane.xlu1 %2297 }
 0x38c   : > { %v3085_v24 = vpop.eup %3084  ;;  %v2392_v46 = vmul.f32 %v3083_v44, %v4231_v28  ;;  %v2332_v51 = vmax.f32 %v2298_v52, 1e-24  ;;  %v2268_v5 = vpop.xlane.xlu0 %2267 }
 0x38d   : > { %v2377_v54 = vmul.f32 %v3085_v24, %v4237_v9  ;;  %v2317_v21 = vmax.f32 %v2268_v5, 1e-24 }
 0x38e   : > { %2424 = vst [vmem:[%s3486_s5 + $0xc8] sm:$0xff] %v2392_v46  ;;  %3098 = vrsqrt.f32 %v2332_v51 }
 0x38f   : > { %2409 = vst [vmem:[%s3486_s5 + $0x50] sm:$0xff] %v2377_v54  ;;  %v3087_v18 = vpop.eup %3086  ;;  %3100 = vrsqrt.f32 %v2317_v21  ;;  %v2270_v9 = vpop.xlane.xlu1 %2269 }
 0x390   : > { %v3089_v1 = vpop.eup %3088  ;;  %v2378_v39 = vmul.f32 %v3087_v18, %v4245_v45  ;;  %v2300_v13 = vpop.xlane.xlu0 %2299  ;;  %v2318_v31 = vmax.f32 %v2270_v9, 1e-24 }
 0x391   : > { %v2393_v28 = vmul.f32 %v3089_v1, %v4241_v8  ;;  %v2333_v26 = vmax.f32 %v2300_v13, 1e-24 }
 0x392   : > { %2410 = vst [vmem:[%s3486_s5 + $0x58] sm:$0xff] %v2378_v39  ;;  %3102 = vrsqrt.f32 %v2318_v31 }
 0x393   : > { %v3091_v12 = vpop.eup %3090  ;;  %2425 = vst [vmem:[%s3486_s5 + $0xd0] sm:$0xff] %v2393_v28  ;;  %3104 = vrsqrt.f32 %v2333_v26  ;;  %v2302_v49 = vpop.xlane.xlu1 %2301 }
 0x394   : > { %v3093_v38 = vpop.eup %3092  ;;  %v2394_v47 = vmul.f32 %v3091_v12, %v4247_v10  ;;  %v2334_v8 = vmax.f32 %v2302_v49, 1e-24 }
 0x395   : > { %v2379_v45 = vmul.f32 %v3093_v38, %v4253_v57 }
 0x396   : > { %2426 = vst [vmem:[%s3486_s5 + $0xd8] sm:$0xff] %v2394_v47  ;;  %3106 = vrsqrt.f32 %v2334_v8 }
 0x397   : > { %2411 = vst [vmem:[%s3486_s5 + $0x60] sm:$0xff] %v2379_v45  ;;  %v3095_v30 = vpop.eup %3094 }
 0x398   : > { %v3097_v2 = vpop.eup %3096  ;;  %v2380_v7 = vmul.f32 %v3095_v30, %v4261_v59 }
 0x399   : > { %v2395_v58 = vmul.f32 %v3097_v2, %v4257_v22 }
 0x39a   : > { %2412 = vst [vmem:[%s3486_s5 + $0x68] sm:$0xff] %v2380_v7 }
 0x39b   : > { %v3099_v10 = vpop.eup %3098  ;;  %2427 = vst [vmem:[%s3486_s5 + $0xe0] sm:$0xff] %v2395_v58 }
 0x39c   : > { %v3101_v57 = vpop.eup %3100  ;;  %v2396_v19 = vmul.f32 %v3099_v10, %v4263_v33 }
 0x39d   : > { %v2381_v50 = vmul.f32 %v3101_v57, %v4269_v20 }
 0x39e   : > { %2428 = vst [vmem:[%s3486_s5 + $0xe8] sm:$0xff] %v2396_v19 }
 0x39f   : > { %2413 = vst [vmem:[%s3486_s5 + $0x70] sm:$0xff] %v2381_v50  ;;  %v3103_v36 = vpop.eup %3102 }
 0x3a0   : > { %v3105_v37 = vpop.eup %3104  ;;  %v2382_v62 = vmul.f32 %v3103_v36, %v4277_v16 }
 0x3a1   : > { %v2397_v59 = vmul.f32 %v3105_v37, %v4273_v3 }
 0x3a2   : > { %2414 = vst [vmem:[%s3486_s5 + $0x78] sm:$0xff] %v2382_v62 }
 0x3a3   : > { %v3107_v32 = vpop.eup %3106  ;;  %2429 = vst [vmem:[%s3486_s5 + $0xf0] sm:$0xff] %v2397_v59 }
 0x3a4   : > { %v2398_v22 = vmul.f32 %v3107_v32, %v4279_v34 }
 0x3a6   : > { %2430 = vst [vmem:[%s3486_s5 + $0xf8] sm:$0xff] %v2398_v22 }
 0x3a7 PF: > { %s2439_s24 = smul.u32 %s3184_s18, %s3188_s19  ;;  %s2446_s12 = sshll.u32 %s3486_s5, 4  ;;  %s4354_s12 = int_to_ptr.vmem [resolvable:$true] %s2446_s12 }
 0x3a8   : > { %s4363_s11 = scalar_lea.sflag [#allocation6], %s220_s8  ;;  %s3108_s13 = scalar_lea.vmem %s4354_s12, 4096 }
 0x3a9   : > { %s2694_s27 = sshll.u32 %s2439_s24, 12  ;;  %p3109_p3 = scmp.ne.s32.totalorder %s4354_s12, %s3108_s13 }
 0x3aa   : > { %s4359_s30 = scalar_lea.hbm %s4418_s4, %s2694_s27  ;;  %s3204_s18 = smov [#allocation5]  }
 0x3ab   : > { %p3110_p4 = pnand %p3109_p3, %p3285_p6  ;;  %s3112_s19 = sshll.u32 %s3204_s18, 4  ;;  %s3113_s19 = int_to_ptr.vmem [resolvable:$false] %s3112_s19 }
 0x3ac   : > { %s3114_s5 = scalar_lea.vmem %s3113_s19, 8192  ;;  %p3115_p7 = scmp.lt.s32.totalorder %s4354_s12, %s3113_s19 }
 0x3ad   : > { %p3111_p5 = pneg %p3110_p4  ;;  %p3116_p9 = scmp.lt.s32.totalorder %s3114_s5, %s3108_s13 }
 0x3af   : > { %p3117_p10 = por %p3116_p9, %p3115_p7 }
 0x3b1   : > { %p3118_p11 = pnand %p3117_p10, %p3111_p5 }
 0x3b3   : > { %3121 = shalt.err (!%p3118_p11)
}
 0x3b4   : > { %s3122_s8 = scalar_lea.hbm %s4359_s30, 4096  ;;  %s3126_s23 = scalar_lea.hbm %s4418_s4, 8192 }
 0x3b5   : > { %p3123_p12 = scmp.ne.s32.totalorder %s4359_s30, %s3122_s8  ;;  %p3127_p1 = scmp.lt.s32.totalorder %s4359_s30, %s4418_s4 }
 0x3b6   : > { %p3128_p2 = scmp.lt.s32.totalorder %s3126_s23, %s3122_s8 }
 0x3b7   : > { %p3124_p13 = pnand %p3123_p12, %p3285_p6 }
 0x3b8   : > { %p3129_p3 = por %p3128_p2, %p3127_p1 }
 0x3b9   : > { %p3125_p0 = pneg %p3124_p13 }
 0x3bb   : > { %p3130_p4 = pnand %p3129_p3, %p3125_p0 }
 0x3bd   : > { %3133 = shalt.err (!%p3130_p4)
}
 0x3be   : > { %s3205_s6 = smov 128   ;;  %s3206_s9 = smov 8  }
 0x3bf   : > { %2855 = dma.vmem_to_hbm [thread:$0]  (%p3285_p6), %s4354_s12, 4096, %s4359_s30, %s4363_s11, %s3205_s6, %s3205_s6, %s3206_s9  }
 0x3c0 PF: > { %p2861_p5 = scmp.ge.s32.totalorder %s3200_s22, 2  ;;  %s2461_s13 = sand.u32 1, %s3172_s15  }
 0x3c1   : > { %s2462_s18 = scalar_lea.sflag [#allocation6], %s2461_s13 }
 0x3c2   : > { %p2858_p7 = pnand %p2861_p5, %p3292_p8 }
 0x3c4   : > { %p2859_p9 = pneg %p2858_p7 }
 0x3c6   : > { %3167 = dma.done.wait (%p2859_p9), %s2462_s18, 4096  }
 0x3c7   : > { %3169 = vsyncadd (%p2859_p9), %s2462_s18, 4294963200  ;;  %s17_s22 = sadd.s32 1, %s3200_s22   ;;  %s4522_s15 = smov %s3176_s16 }
 0x3c8   : > { %p14_p10 = scmp.ge.s32.totalorder %s17_s22, 6   ;;  %s4523_s16 = smov %s3180_s17 }
 0x3c9   : > { %s4524_s17 = smov %s3301_s7  ;;  %s4525_s18 = smov %s3192_s20 }
 0x3ca   : > { %s4526_s19 = smov %s3196_s21  ;;  %s4527_s20 = smov %s4530_s25 }
 0x3cb   : > { %s4528_s21 = smov %s4534_s26  ;;  %16 = sbr.rel (!%p14_p10) target bundleno = 5 (0x5), region = 90 }
 0x3d0   :  { %2467 = vsyncpa [#allocation6], 1 }
 0x3d1   :  { %2469 = vsyncpa [#allocation6 + $0x1], 1 }

</bundles_post_ra>
